<compile_context>
chip_gen: v7x
topology: tpu7x:2x2x1
jax: 0.10.0
libtpu: 0.0.40
codegen_flags: <defaults>
</compile_context>

<pallas_src>
import functools

import jax
import jax.numpy as jnp
from jax.experimental import pallas as pl
from jax.experimental.pallas import tpu as pltpu

_VMEM_LIMIT = 32 * 1024 * 1024    # explicit scoped-VMEM budget (safe on v5e/v6e/v7x)
_TILE_ROWS = 512                  # target flattened-HW rows per block


# ---------------------------------------------------------------------------
# Small helpers (wrapper-side, layout only)
# ---------------------------------------------------------------------------

def _pick_tile_h(h, w, target_rows):
    """Largest divisor of h whose row tile has roughly <= target_rows HW rows."""
    th = max(1, min(h, max(1, target_rows // max(w, 1))))
    while h % th:
        th -= 1
    return th


def _halo_rows_flat(x, tile_h):
    """(N,H,W,C) f32 -> bf16 (N, n_t, (tile_h+3)*(W+2), C).

    Per-row-tile haloed + W-padded + flattened blocks for the in-kernel halo
    conv (replaces the 9x im2col blow-up; overhead is ~one activation copy)."""
    n, h, w, c = x.shape
    n_t = h // tile_h
    xp = jnp.pad(x.astype(jnp.bfloat16), ((0, 0), (1, 2), (1, 1), (0, 0)))
    idx = (jnp.arange(n_t)[:, None] * tile_h
           + jnp.arange(tile_h + 3)[None, :]).reshape(-1)
    xh = jnp.take(xp, idx, axis=1)                        # (N, n_t*(th+3), W+2, C)
    return xh.reshape(n, n_t, (tile_h + 3) * (w + 2), c), n_t


# ---------------------------------------------------------------------------
# Pallas kernels
# ---------------------------------------------------------------------------

def _conv3x3_flat(x_ref, w_ref, th, wp):
    """Nine shifted (th*wp, C) x (C, C) bf16 matmuls accumulated in f32.

    x_ref block: (1, 1, (th+3)*wp, C) flattened haloed rows.  The result's
    last two columns of every wp-wide row group are W-halo garbage and are
    masked / sliced off by the caller."""
    m = th * wp
    acc = None
    for dy in range(3):
        for dx in range(3):
            k = dy * wp + dx
            patch = x_ref[0, 0, pl.ds(k, m), :]           # (m, C) bf16, contiguous
            y = jnp.dot(patch, w_ref[dy * 3 + dx],
                        preferred_element_type=jnp.float32)
            acc = y if acc is None else acc + y
    return acc                                            # (m, C) f32


def _conv3_bn_relu_kernel(x_ref, w_ref, scale_ref, shift_ref, out_ref, *, th, wp):
    y = _conv3x3_flat(x_ref, w_ref, th, wp)
    y = jnp.maximum(y * scale_ref[...] + shift_ref[...], 0.0)
    out_ref[0, 0] = y.astype(out_ref.dtype)


def _level_weight_kernel(x_ref, mw_ref, w_ref, scale_ref, shift_ref,
                         w1_ref, b1_ref, out_ref, acc_ref, *, th, wp):
    # conv3x3 (halo matmuls) -> BN -> ReLU -> masked partial GAP (grid reduction)
    # -> (last tile) 1x1 conv C->1.
    t = pl.program_id(1)

    @pl.when(t == 0)
    def _init():
        acc_ref[...] = jnp.zeros_like(acc_ref)

    y = _conv3x3_flat(x_ref, w_ref, th, wp)
    y = jnp.maximum(y * scale_ref[...] + shift_ref[...], 0.0)
    # mw carries 1/(H*W) on valid columns and 0 on the two W-halo columns.
    acc_ref[...] += jnp.sum(y * mw_ref[...], axis=0, keepdims=True)

    @pl.when(t == pl.num_programs(1) - 1)
    def _finalize():
        wt = jnp.sum(acc_ref[...] * w1_ref[...], axis=1, keepdims=True) + b1_ref[...]
        out_ref[0] = wt


def _fusion_kernel(wt_ref, *refs):
    # wt_ref (SMEM, full): (N, L); per-level tile refs: (1, th, W, C); out same.
    feat_refs, out_ref = refs[:-1], refs[-1]
    b = pl.program_id(0)
    acc = wt_ref[b, 0] * feat_refs[0][0]
    for lvl in range(1, len(feat_refs)):
        acc = acc + wt_ref[b, lvl] * feat_refs[lvl][0]
    out_ref[0] = acc


def _pool_max_kernel(s_ref, o_ref):
    # s_ref: (1, th, fy, Wo, fx, C) natural-layout view; out: (1, th, Wo, C)
    m = jnp.max(s_ref[0], axis=3)            # max over fx (window cols)
    o_ref[0] = jnp.max(m, axis=1)            # max over fy (window rows)


def _pool_max_add_kernel(s_ref, r_ref, o_ref):
    m = jnp.max(s_ref[0], axis=3)
    o_ref[0] = jnp.max(m, axis=1) + r_ref[0]


def _up_add_kernel(w_ref, x_ref, o_ref):
    # nearest-upsample of the refined feature via in-kernel broadcast + residual
    # x_ref/o_ref: (1, th, fy, Wg, fx, C) views of the level tensor; w: (1, th, Wg, C)
    w = w_ref[0]
    o_ref[0] = x_ref[0] + w[:, None, :, None, :]


# ---------------------------------------------------------------------------
# Wrappers (pallas_call setup)
# ---------------------------------------------------------------------------

def conv3_bn_relu(x, w_hwio, scale, shift, tile_rows=_TILE_ROWS):
    n, h, w, c = x.shape
    th = _pick_tile_h(h, w, tile_rows)
    wp = w + 2
    xh, n_t = _halo_rows_flat(x, th)
    lh, lo = (th + 3) * wp, th * wp
    kernel = functools.partial(_conv3_bn_relu_kernel, th=th, wp=wp)
    out = pl.pallas_call(
        kernel,
        out_shape=jax.ShapeDtypeStruct((n, n_t, lo, c), jnp.float32),
        grid=(n, n_t),
        in_specs=[
            pl.BlockSpec((1, 1, lh, c), lambda b, t: (b, t, 0, 0)),
            pl.BlockSpec((9, c, c), lambda b, t: (0, 0, 0)),
            pl.BlockSpec((1, c), lambda b, t: (0, 0)),
            pl.BlockSpec((1, c), lambda b, t: (0, 0)),
        ],
        out_specs=pl.BlockSpec((1, 1, lo, c), lambda b, t: (b, t, 0, 0)),
        compiler_params=pltpu.CompilerParams(
            dimension_semantics=("parallel", "parallel"),
            vmem_limit_bytes=_VMEM_LIMIT),
    )(xh,
      w_hwio.reshape(9, c, c).astype(jnp.bfloat16),
      scale.reshape(1, c), shift.reshape(1, c))
    # drop the two W-halo columns carried inside every flattened row group
    out = out.reshape(n, n_t, th, wp, c)[:, :, :, :w, :]
    return out.reshape(n, h, w, c)


def level_weight(x, w3, scale, shift, w1, b1, tile_rows=_TILE_ROWS):
    """convs3_list[i] -> global avg pool -> convs1_list[i]; returns (N,) scalars."""
    n, h, w, c = x.shape
    th = _pick_tile_h(h, w, tile_rows)
    wp = w + 2
    xh, n_t = _halo_rows_flat(x, th)
    lh, lo = (th + 3) * wp, th * wp
    mw = jnp.where(jnp.arange(lo) % wp < w, 1.0 / (h * w), 0.0)
    mw = mw.reshape(lo, 1).astype(jnp.float32)
    kernel = functools.partial(_level_weight_kernel, th=th, wp=wp)
    out = pl.pallas_call(
        kernel,
        out_shape=jax.ShapeDtypeStruct((n, 1, 1), jnp.float32),
        grid=(n, n_t),
        in_specs=[
            pl.BlockSpec((1, 1, lh, c), lambda b, t: (b, t, 0, 0)),
            pl.BlockSpec((lo, 1), lambda b, t: (0, 0)),
            pl.BlockSpec((9, c, c), lambda b, t: (0, 0, 0)),
            pl.BlockSpec((1, c), lambda b, t: (0, 0)),
            pl.BlockSpec((1, c), lambda b, t: (0, 0)),
            pl.BlockSpec((1, c), lambda b, t: (0, 0)),
            pl.BlockSpec((1, 1), lambda b, t: (0, 0)),
        ],
        out_specs=pl.BlockSpec((1, 1, 1), lambda b, t: (b, 0, 0)),
        scratch_shapes=[pltpu.VMEM((1, c), jnp.float32)],
        compiler_params=pltpu.CompilerParams(
            dimension_semantics=("parallel", "arbitrary"),
            vmem_limit_bytes=_VMEM_LIMIT),
    )(xh, mw,
      w3.reshape(9, c, c).astype(jnp.bfloat16),
      scale.reshape(1, c), shift.reshape(1, c),
      w1.reshape(1, c), b1.reshape(1, 1))
    return out.reshape(n)


def weighted_fusion(feats, weights, tile_rows=_TILE_ROWS):
    """feats: list of (N, Hg, Wg, C); weights: (N, L) in SMEM."""
    n, gh, gw, c = feats[0].shape
    num_levels = len(feats)
    th = _pick_tile_h(gh, gw, tile_rows)
    n_t = gh // th
    tile_spec = pl.BlockSpec((1, th, gw, c), lambda b, t: (b, t, 0, 0))
    return pl.pallas_call(
        _fusion_kernel,
        out_shape=jax.ShapeDtypeStruct((n, gh, gw, c), jnp.float32),
        grid=(n, n_t),
        in_specs=[pl.BlockSpec(memory_space=pltpu.MemorySpace.SMEM)]
                 + [tile_spec] * num_levels,
        out_specs=tile_spec,
        compiler_params=pltpu.CompilerParams(
            dimension_semantics=("parallel", "parallel"),
            vmem_limit_bytes=_VMEM_LIMIT),
    )(weights, *feats)


def pool_max(src, out_hw, tile_rows=_TILE_ROWS):
    """adaptive_max_pool2d for exact integer factors (no residual)."""
    n, hs, ws, c = src.shape
    ho, wo = out_hw
    fy, fx = hs // ho, ws // wo
    sv = src.reshape(n, ho, fy, wo, fx, c)     # free, layout-preserving view
    th = _pick_tile_h(ho, wo, tile_rows)
    n_t = ho // th
    return pl.pallas_call(
        _pool_max_kernel,
        out_shape=jax.ShapeDtypeStruct((n, ho, wo, c), src.dtype),
        grid=(n, n_t),
        in_specs=[pl.BlockSpec((1, th, fy, wo, fx, c),
                               lambda b, t: (b, t, 0, 0, 0, 0))],
        out_specs=pl.BlockSpec((1, th, wo, c), lambda b, t: (b, t, 0, 0)),
        compiler_params=pltpu.CompilerParams(
            dimension_semantics=("parallel", "parallel"),
            vmem_limit_bytes=_VMEM_LIMIT),
    )(sv)


def pool_max_add(src, residual, tile_rows=_TILE_ROWS):
    """adaptive_max_pool2d(src, residual.shape[1:3]) + residual (fused)."""
    n, hs, ws, c = src.shape
    _, ho, wo, _ = residual.shape
    fy, fx = hs // ho, ws // wo
    sv = src.reshape(n, ho, fy, wo, fx, c)
    th = _pick_tile_h(ho, wo, tile_rows)
    n_t = ho // th
    return pl.pallas_call(
        _pool_max_add_kernel,
        out_shape=jax.ShapeDtypeStruct((n, ho, wo, c), residual.dtype),
        grid=(n, n_t),
        in_specs=[
            pl.BlockSpec((1, th, fy, wo, fx, c), lambda b, t: (b, t, 0, 0, 0, 0)),
            pl.BlockSpec((1, th, wo, c), lambda b, t: (b, t, 0, 0)),
        ],
        out_specs=pl.BlockSpec((1, th, wo, c), lambda b, t: (b, t, 0, 0)),
        compiler_params=pltpu.CompilerParams(
            dimension_semantics=("parallel", "parallel"),
            vmem_limit_bytes=_VMEM_LIMIT),
    )(sv, residual)


def up_add(wff, residual, tile_rows=_TILE_ROWS):
    """nearest-upsample(wff) + residual, upsample done via in-kernel broadcast."""
    n, gh, gw, c = wff.shape
    _, ho, wo, _ = residual.shape
    fy, fx = ho // gh, wo // gw
    rv = residual.reshape(n, gh, fy, gw, fx, c)
    th = _pick_tile_h(gh, gw, tile_rows)
    n_t = gh // th
    out = pl.pallas_call(
        _up_add_kernel,
        out_shape=jax.ShapeDtypeStruct((n, gh, fy, gw, fx, c), residual.dtype),
        grid=(n, n_t),
        in_specs=[
            pl.BlockSpec((1, th, gw, c), lambda b, t: (b, t, 0, 0)),
            pl.BlockSpec((1, th, fy, gw, fx, c), lambda b, t: (b, t, 0, 0, 0, 0)),
        ],
        out_specs=pl.BlockSpec((1, th, fy, gw, fx, c),
                               lambda b, t: (b, t, 0, 0, 0, 0)),
        compiler_params=pltpu.CompilerParams(
            dimension_semantics=("parallel", "parallel"),
            vmem_limit_bytes=_VMEM_LIMIT),
    )(wff, rv)
    return out.reshape(n, ho, wo, c)


def nearest_up(x, out_hw):
    fy = out_hw[0] // x.shape[1]
    fx = out_hw[1] // x.shape[2]
    return jnp.repeat(jnp.repeat(x, fy, axis=1), fx, axis=2)


# ---------------------------------------------------------------------------
# WFR forward
# ---------------------------------------------------------------------------

def wfr_forward(params, inputs, refine_level=0, tile_rows=_TILE_ROWS):
    num_levels = len(inputs)
    assert 0 <= refine_level < num_levels

    # --- get_weights: per level conv3+BN+ReLU -> GAP -> 1x1 conv; softmax(dim=0)
    # TODO(synk): the L per-level launches could be fused into one pallas_call
    #             via scalar-prefetched per-level offsets.
    raw = [level_weight(inputs[i], params["w3"][i], params["s3"][i],
                        params["sh3"][i], params["w1"][i], params["b1"][i],
                        tile_rows) for i in range(num_levels)]
    weights = jax.nn.softmax(jnp.stack(raw, axis=0), axis=0)   # (L, N)
    weights = jnp.transpose(weights)                           # (N, L)

    # --- gather every level to the refine_level resolution
    gh, gw = inputs[refine_level].shape[1:3]
    feats = []
    for i, x in enumerate(inputs):
        if i < refine_level:
            feats.append(pool_max(x, (gh, gw), tile_rows))
        elif i == refine_level:
            feats.append(x)
        else:
            # TODO(synk): fold the nearest-upsample of coarse levels into the
            # fusion kernel (read the coarse block + broadcast in-kernel).
            feats.append(nearest_up(x, (gh, gw)))

    # --- softmax-weighted fusion (per-level block refs; no stacked copy)
    wff = weighted_fusion(feats, weights, tile_rows)

    # --- refine (3x3 ConvModule on the fused feature)
    wff = conv3_bn_relu(wff, params["rw"], params["rs"], params["rsh"], tile_rows)

    # --- scatter the refined feature back to every level + residual
    outs = []
    for i, x in enumerate(inputs):
        if i <= refine_level:
            outs.append(up_add(wff, x, tile_rows))        # nearest up (or id) + add
        else:
            outs.append(pool_max_add(wff, x, tile_rows))  # adaptive max pool + add
    return tuple(outs)


# ---------------------------------------------------------------------------
# Deterministic parameters + pure-JAX reference (for validation)
# ---------------------------------------------------------------------------

def init_params(key, c, num_levels):
    ks = jax.random.split(key, 5)

    def xavier(k, shape, fan_in, fan_out):
        bound = (6.0 / (fan_in + fan_out)) ** 0.5
        return jax.random.uniform(k, shape, jnp.float32, -bound, bound)

    def folded_bn(k, shape):
        kg, kb, km, kv = jax.random.split(k, 4)
        gamma = 1.0 + 0.1 * jax.random.normal(kg, shape)
        beta = 0.1 * jax.random.normal(kb, shape)
        mean = 0.1 * jax.random.normal(km, shape)
        var = 1.0 + 0.1 * jax.random.uniform(kv, shape)
        scale = gamma / jnp.sqrt(var + 1e-5)
        shift = beta - mean * scale
        return scale.astype(jnp.float32), shift.astype(jnp.float32)

    w3 = xavier(ks[0], (num_levels, 3, 3, c, c), 9 * c, 9 * c)   # HWIO
    w1 = xavier(ks[1], (num_levels, c), c, 1)                    # 1x1 conv C->1
    b1 = jnp.zeros((num_levels,), jnp.float32)
    s3, sh3 = folded_bn(ks[2], (num_levels, c))
    rw = xavier(ks[3], (3, 3, c, c), 9 * c, 9 * c)
    rs, rsh = folded_bn(ks[4], (c,))
    return {"w3": w3, "s3": s3, "sh3": sh3, "w1": w1, "b1": b1,
            "rw": rw, "rs": rs, "rsh": rsh}


def _ref_conv_bn_relu(x, w, s, sh):
    y = jax.lax.conv_general_dilated(
        x, w, (1, 1), ((1, 1), (1, 1)),
        dimension_numbers=("NHWC", "HWIO", "NHWC"),
        precision=jax.lax.Precision.HIGHEST)
    return jnp.maximum(y * s + sh, 0.0)


def _ref_pool(x, out_hw):
    n, h, w, c = x.shape
    ho, wo = out_hw
    return jnp.max(x.reshape(n, ho, h // ho, wo, w // wo, c), axis=(2, 4))


def wfr_reference(params, inputs, refine_level):
    num_levels = len(inputs)
    raw = []
    for i, x in enumerate(inputs):
        y = _ref_conv_bn_relu(x, params["w3"][i], params["s3"][i], params["sh3"][i])
        g = jnp.mean(y, axis=(1, 2))
        raw.append(g @ params["w1"][i] + params["b1"][i])
    w = jax.nn.softmax(jnp.stack(raw, axis=0), axis=0)           # (L, N)
    gh, gw = inputs[refine_level].shape[1:3]
    feats = []
    for i, x in enumerate(inputs):
        if i < refine_level:
            feats.append(_ref_pool(x, (gh, gw)))
        elif i == refine_level:
            feats.append(x)
        else:
            feats.append(nearest_up(x, (gh, gw)))
    wff = sum(w[i][:, None, None, None] * feats[i] for i in range(num_levels))
    wff = _ref_conv_bn_relu(wff, params["rw"], params["rs"], params["rsh"])
    outs = []
    for i, x in enumerate(inputs):
        h, wdt = x.shape[1:3]
        if i < refine_level:
            outs.append(nearest_up(wff, (h, wdt)) + x)
        elif i == refine_level:
            outs.append(wff + x)
        else:
            outs.append(_ref_pool(wff, (h, wdt)) + x)
    return outs


# ---------------------------------------------------------------------------
# Demo
# ---------------------------------------------------------------------------

if __name__ == "__main__":
    C, L, N = 8, 3, 2
    REFINE_LEVEL = 1
    sizes = [(16, 16), (8, 8), (4, 4)]     # FPN-style power-of-two pyramid
    TILE_ROWS = 128                        # small target so the demo multi-tiles

    key = jax.random.PRNGKey(0)
    kp, kx = jax.random.split(key)
    params = init_params(kp, C, L)
    xkeys = jax.random.split(kx, L)
    inputs = [jax.random.normal(xkeys[i], (N, h, w, C), jnp.float32)
              for i, (h, w) in enumerate(sizes)]

    outs = wfr_forward(params, inputs, refine_level=REFINE_LEVEL,
                       tile_rows=TILE_ROWS)
    outs = jax.block_until_ready(outs)

    refs = wfr_reference(params, inputs, refine_level=REFINE_LEVEL)
    for o, x, r in zip(outs, inputs, refs):
        assert o.shape == x.shape and o.dtype == x.dtype
        assert bool(jnp.all(jnp.isfinite(o)))
        err = float(jnp.max(jnp.abs(o - r)))
        # bf16 MXU operands give ~1e-2 abs error; a real bug would be O(1).
        assert err < 0.3, f"max abs err vs reference: {err}"
    print("KERNEL_OK")
</pallas_src>

<mosaic_0001>
module attributes {stable_mosaic.version = 11 : i64} {
  func.func @_level_weight_kernel(%arg0: i32, %arg1: i32, %arg2: memref<1x1x198x8xbf16, #tpu.memory_space<vmem>>, %arg3: memref<144x1xf32, #tpu.memory_space<vmem>>, %arg4: memref<9x8x8xbf16, #tpu.memory_space<vmem>>, %arg5: memref<1x8xf32, #tpu.memory_space<vmem>>, %arg6: memref<1x8xf32, #tpu.memory_space<vmem>>, %arg7: memref<1x8xf32, #tpu.memory_space<vmem>>, %arg8: memref<1x1xf32, #tpu.memory_space<vmem>>, %arg9: memref<1x1x1xf32, #tpu.memory_space<vmem>>, %arg10: memref<1x8xf32, #tpu.memory_space<vmem>>) attributes {dimension_semantics = [#tpu.dimension_semantics<parallel>, #tpu.dimension_semantics<arbitrary>], iteration_bounds = array<i64: 2, 2>, scalar_prefetch = 0 : i64, scratch_operands = 1 : i64, tpu.core_type = #tpu.core_type<tc>, window_params = [{transform_indices = @transform_0, window_bounds = array<i64: 1, 1, 198, 8>}, {pipeline_mode = #tpu.pipeline_mode<synchronous>, transform_indices = @transform_1, window_bounds = array<i64: 144, 1>}, {pipeline_mode = #tpu.pipeline_mode<synchronous>, transform_indices = @transform_2, window_bounds = array<i64: 9, 8, 8>}, {pipeline_mode = #tpu.pipeline_mode<synchronous>, transform_indices = @transform_3, window_bounds = array<i64: 1, 8>}, {pipeline_mode = #tpu.pipeline_mode<synchronous>, transform_indices = @transform_4, window_bounds = array<i64: 1, 8>}, {pipeline_mode = #tpu.pipeline_mode<synchronous>, transform_indices = @transform_5, window_bounds = array<i64: 1, 8>}, {pipeline_mode = #tpu.pipeline_mode<synchronous>, transform_indices = @transform_6, window_bounds = array<i64: 1, 1>}, {transform_indices = @transform_7, window_bounds = array<i64: 1, 1, 1>}]} {
    %c0_i32 = arith.constant 0 : i32
    %0 = arith.cmpi eq, %arg1, %c0_i32 : i32
    %1 = arith.extui %0 : i1 to i32
    %c0_i32_0 = arith.constant 0 : i32
    %2 = arith.cmpi ne, %1, %c0_i32_0 : i32
    scf.if %2 {
      %cst_70 = arith.constant 0.000000e+00 : f32
      %75 = vector.broadcast %cst_70 : f32 to vector<1x8xf32>
      %c0_71 = arith.constant 0 : index
      %c0_72 = arith.constant 0 : index
      %76 = vector.load %arg10[%c0_71, %c0_72] : memref<1x8xf32, #tpu.memory_space<vmem>>, vector<1x8xf32>
      tpu.vector_store %arg10[%c0_71, %c0_72], %75 {strides = array<i32>} : memref<1x8xf32, #tpu.memory_space<vmem>>, vector<1x8xf32>,
    } else {
    }
    %c0 = arith.constant 0 : index
    %c0_1 = arith.constant 0 : index
    %c0_2 = arith.constant 0 : index
    %c0_3 = arith.constant 0 : index
    %3 = vector.load %arg2[%c0, %c0_1, %c0_2, %c0_3] : memref<1x1x198x8xbf16, #tpu.memory_space<vmem>>, vector<1x1x144x8xbf16>
    %4 = vector.shape_cast %3 : vector<1x1x144x8xbf16> to vector<144x8xbf16>
    %c0_4 = arith.constant 0 : index
    %c0_5 = arith.constant 0 : index
    %c0_6 = arith.constant 0 : index
    %5 = vector.load %arg4[%c0_4, %c0_5, %c0_6] : memref<9x8x8xbf16, #tpu.memory_space<vmem>>, vector<1x8x8xbf16>
    %6 = vector.shape_cast %5 : vector<1x8x8xbf16> to vector<8x8xbf16>
    %cst = arith.constant dense<0.000000e+00> : vector<144x8xf32>
    %7 = tpu.matmul %4, %6, %cst {dimension_numbers = #tpu.dot_dimension_numbers<[1], [0], [0], [1], [0, 0, 1, 1], [], []>} : vector<144x8xbf16>, vector<8x8xbf16>, vector<144x8xf32> -> vector<144x8xf32>
    %c0_7 = arith.constant 0 : index
    %c0_8 = arith.constant 0 : index
    %c1 = arith.constant 1 : index
    %c0_9 = arith.constant 0 : index
    %8 = vector.load %arg2[%c0_7, %c0_8, %c1, %c0_9] : memref<1x1x198x8xbf16, #tpu.memory_space<vmem>>, vector<1x1x144x8xbf16>
    %9 = vector.shape_cast %8 : vector<1x1x144x8xbf16> to vector<144x8xbf16>
    %c1_10 = arith.constant 1 : index
    %c0_11 = arith.constant 0 : index
    %c0_12 = arith.constant 0 : index
    %10 = vector.load %arg4[%c1_10, %c0_11, %c0_12] : memref<9x8x8xbf16, #tpu.memory_space<vmem>>, vector<1x8x8xbf16>
    %11 = vector.shape_cast %10 : vector<1x8x8xbf16> to vector<8x8xbf16>
    %cst_13 = arith.constant dense<0.000000e+00> : vector<144x8xf32>
    %12 = tpu.matmul %9, %11, %cst_13 {dimension_numbers = #tpu.dot_dimension_numbers<[1], [0], [0], [1], [0, 0, 1, 1], [], []>} : vector<144x8xbf16>, vector<8x8xbf16>, vector<144x8xf32> -> vector<144x8xf32>
    %13 = arith.addf %7, %12 : vector<144x8xf32>
    %c0_14 = arith.constant 0 : index
    %c0_15 = arith.constant 0 : index
    %c2 = arith.constant 2 : index
    %c0_16 = arith.constant 0 : index
    %14 = vector.load %arg2[%c0_14, %c0_15, %c2, %c0_16] : memref<1x1x198x8xbf16, #tpu.memory_space<vmem>>, vector<1x1x144x8xbf16>
    %15 = vector.shape_cast %14 : vector<1x1x144x8xbf16> to vector<144x8xbf16>
    %c2_17 = arith.constant 2 : index
    %c0_18 = arith.constant 0 : index
    %c0_19 = arith.constant 0 : index
    %16 = vector.load %arg4[%c2_17, %c0_18, %c0_19] : memref<9x8x8xbf16, #tpu.memory_space<vmem>>, vector<1x8x8xbf16>
    %17 = vector.shape_cast %16 : vector<1x8x8xbf16> to vector<8x8xbf16>
    %cst_20 = arith.constant dense<0.000000e+00> : vector<144x8xf32>
    %18 = tpu.matmul %15, %17, %cst_20 {dimension_numbers = #tpu.dot_dimension_numbers<[1], [0], [0], [1], [0, 0, 1, 1], [], []>} : vector<144x8xbf16>, vector<8x8xbf16>, vector<144x8xf32> -> vector<144x8xf32>
    %19 = arith.addf %13, %18 : vector<144x8xf32>
    %c0_21 = arith.constant 0 : index
    %c0_22 = arith.constant 0 : index
    %c18 = arith.constant 18 : index
    %c0_23 = arith.constant 0 : index
    %20 = vector.load %arg2[%c0_21, %c0_22, %c18, %c0_23] : memref<1x1x198x8xbf16, #tpu.memory_space<vmem>>, vector<1x1x144x8xbf16>
    %21 = vector.shape_cast %20 : vector<1x1x144x8xbf16> to vector<144x8xbf16>
    %c3 = arith.constant 3 : index
    %c0_24 = arith.constant 0 : index
    %c0_25 = arith.constant 0 : index
    %22 = vector.load %arg4[%c3, %c0_24, %c0_25] : memref<9x8x8xbf16, #tpu.memory_space<vmem>>, vector<1x8x8xbf16>
    %23 = vector.shape_cast %22 : vector<1x8x8xbf16> to vector<8x8xbf16>
    %cst_26 = arith.constant dense<0.000000e+00> : vector<144x8xf32>
    %24 = tpu.matmul %21, %23, %cst_26 {dimension_numbers = #tpu.dot_dimension_numbers<[1], [0], [0], [1], [0, 0, 1, 1], [], []>} : vector<144x8xbf16>, vector<8x8xbf16>, vector<144x8xf32> -> vector<144x8xf32>
    %25 = arith.addf %19, %24 : vector<144x8xf32>
    %c0_27 = arith.constant 0 : index
    %c0_28 = arith.constant 0 : index
    %c19 = arith.constant 19 : index
    %c0_29 = arith.constant 0 : index
    %26 = vector.load %arg2[%c0_27, %c0_28, %c19, %c0_29] : memref<1x1x198x8xbf16, #tpu.memory_space<vmem>>, vector<1x1x144x8xbf16>
    %27 = vector.shape_cast %26 : vector<1x1x144x8xbf16> to vector<144x8xbf16>
    %c4 = arith.constant 4 : index
    %c0_30 = arith.constant 0 : index
    %c0_31 = arith.constant 0 : index
    %28 = vector.load %arg4[%c4, %c0_30, %c0_31] : memref<9x8x8xbf16, #tpu.memory_space<vmem>>, vector<1x8x8xbf16>
    %29 = vector.shape_cast %28 : vector<1x8x8xbf16> to vector<8x8xbf16>
    %cst_32 = arith.constant dense<0.000000e+00> : vector<144x8xf32>
    %30 = tpu.matmul %27, %29, %cst_32 {dimension_numbers = #tpu.dot_dimension_numbers<[1], [0], [0], [1], [0, 0, 1, 1], [], []>} : vector<144x8xbf16>, vector<8x8xbf16>, vector<144x8xf32> -> vector<144x8xf32>
    %31 = arith.addf %25, %30 : vector<144x8xf32>
    %c0_33 = arith.constant 0 : index
    %c0_34 = arith.constant 0 : index
    %c20 = arith.constant 20 : index
    %c0_35 = arith.constant 0 : index
    %32 = vector.load %arg2[%c0_33, %c0_34, %c20, %c0_35] : memref<1x1x198x8xbf16, #tpu.memory_space<vmem>>, vector<1x1x144x8xbf16>
    %33 = vector.shape_cast %32 : vector<1x1x144x8xbf16> to vector<144x8xbf16>
    %c5 = arith.constant 5 : index
    %c0_36 = arith.constant 0 : index
    %c0_37 = arith.constant 0 : index
    %34 = vector.load %arg4[%c5, %c0_36, %c0_37] : memref<9x8x8xbf16, #tpu.memory_space<vmem>>, vector<1x8x8xbf16>
    %35 = vector.shape_cast %34 : vector<1x8x8xbf16> to vector<8x8xbf16>
    %cst_38 = arith.constant dense<0.000000e+00> : vector<144x8xf32>
    %36 = tpu.matmul %33, %35, %cst_38 {dimension_numbers = #tpu.dot_dimension_numbers<[1], [0], [0], [1], [0, 0, 1, 1], [], []>} : vector<144x8xbf16>, vector<8x8xbf16>, vector<144x8xf32> -> vector<144x8xf32>
    %37 = arith.addf %31, %36 : vector<144x8xf32>
    %c0_39 = arith.constant 0 : index
    %c0_40 = arith.constant 0 : index
    %c36 = arith.constant 36 : index
    %c0_41 = arith.constant 0 : index
    %38 = vector.load %arg2[%c0_39, %c0_40, %c36, %c0_41] : memref<1x1x198x8xbf16, #tpu.memory_space<vmem>>, vector<1x1x144x8xbf16>
    %39 = vector.shape_cast %38 : vector<1x1x144x8xbf16> to vector<144x8xbf16>
    %c6 = arith.constant 6 : index
    %c0_42 = arith.constant 0 : index
    %c0_43 = arith.constant 0 : index
    %40 = vector.load %arg4[%c6, %c0_42, %c0_43] : memref<9x8x8xbf16, #tpu.memory_space<vmem>>, vector<1x8x8xbf16>
    %41 = vector.shape_cast %40 : vector<1x8x8xbf16> to vector<8x8xbf16>
    %cst_44 = arith.constant dense<0.000000e+00> : vector<144x8xf32>
    %42 = tpu.matmul %39, %41, %cst_44 {dimension_numbers = #tpu.dot_dimension_numbers<[1], [0], [0], [1], [0, 0, 1, 1], [], []>} : vector<144x8xbf16>, vector<8x8xbf16>, vector<144x8xf32> -> vector<144x8xf32>
    %43 = arith.addf %37, %42 : vector<144x8xf32>
    %c0_45 = arith.constant 0 : index
    %c0_46 = arith.constant 0 : index
    %c37 = arith.constant 37 : index
    %c0_47 = arith.constant 0 : index
    %44 = vector.load %arg2[%c0_45, %c0_46, %c37, %c0_47] : memref<1x1x198x8xbf16, #tpu.memory_space<vmem>>, vector<1x1x144x8xbf16>
    %45 = vector.shape_cast %44 : vector<1x1x144x8xbf16> to vector<144x8xbf16>
    %c7 = arith.constant 7 : index
    %c0_48 = arith.constant 0 : index
    %c0_49 = arith.constant 0 : index
    %46 = vector.load %arg4[%c7, %c0_48, %c0_49] : memref<9x8x8xbf16, #tpu.memory_space<vmem>>, vector<1x8x8xbf16>
    %47 = vector.shape_cast %46 : vector<1x8x8xbf16> to vector<8x8xbf16>
    %cst_50 = arith.constant dense<0.000000e+00> : vector<144x8xf32>
    %48 = tpu.matmul %45, %47, %cst_50 {dimension_numbers = #tpu.dot_dimension_numbers<[1], [0], [0], [1], [0, 0, 1, 1], [], []>} : vector<144x8xbf16>, vector<8x8xbf16>, vector<144x8xf32> -> vector<144x8xf32>
    %49 = arith.addf %43, %48 : vector<144x8xf32>
    %c0_51 = arith.constant 0 : index
    %c0_52 = arith.constant 0 : index
    %c38 = arith.constant 38 : index
    %c0_53 = arith.constant 0 : index
    %50 = vector.load %arg2[%c0_51, %c0_52, %c38, %c0_53] : memref<1x1x198x8xbf16, #tpu.memory_space<vmem>>, vector<1x1x144x8xbf16>
    %51 = vector.shape_cast %50 : vector<1x1x144x8xbf16> to vector<144x8xbf16>
    %c8 = arith.constant 8 : index
    %c0_54 = arith.constant 0 : index
    %c0_55 = arith.constant 0 : index
    %52 = vector.load %arg4[%c8, %c0_54, %c0_55] : memref<9x8x8xbf16, #tpu.memory_space<vmem>>, vector<1x8x8xbf16>
    %53 = vector.shape_cast %52 : vector<1x8x8xbf16> to vector<8x8xbf16>
    %cst_56 = arith.constant dense<0.000000e+00> : vector<144x8xf32>
    %54 = tpu.matmul %51, %53, %cst_56 {dimension_numbers = #tpu.dot_dimension_numbers<[1], [0], [0], [1], [0, 0, 1, 1], [], []>} : vector<144x8xbf16>, vector<8x8xbf16>, vector<144x8xf32> -> vector<144x8xf32>
    %55 = arith.addf %49, %54 : vector<144x8xf32>
    %c0_57 = arith.constant 0 : index
    %c0_58 = arith.constant 0 : index
    %56 = vector.load %arg5[%c0_57, %c0_58] : memref<1x8xf32, #tpu.memory_space<vmem>>, vector<1x8xf32>
    %57 = vector.broadcast %56 : vector<1x8xf32> to vector<144x8xf32>
    %58 = arith.mulf %55, %57 : vector<144x8xf32>
    %c0_59 = arith.constant 0 : index
    %c0_60 = arith.constant 0 : index
    %59 = vector.load %arg6[%c0_59, %c0_60] : memref<1x8xf32, #tpu.memory_space<vmem>>, vector<1x8xf32>
    %60 = vector.broadcast %59 : vector<1x8xf32> to vector<144x8xf32>
    %61 = arith.addf %58, %60 : vector<144x8xf32>
    %cst_61 = arith.constant 0.000000e+00 : f32
    %62 = vector.broadcast %cst_61 : f32 to vector<144x8xf32>
    %63 = arith.maximumf %61, %62 : vector<144x8xf32>
    %c0_62 = arith.constant 0 : index
    %c0_63 = arith.constant 0 : index
    %64 = vector.load %arg10[%c0_62, %c0_63] : memref<1x8xf32, #tpu.memory_space<vmem>>, vector<1x8xf32>
    %c0_64 = arith.constant 0 : index
    %c0_65 = arith.constant 0 : index
    %65 = vector.load %arg3[%c0_64, %c0_65] : memref<144x1xf32, #tpu.memory_space<vmem>>, vector<144x1xf32>
    %66 = vector.broadcast %65 : vector<144x1xf32> to vector<144x8xf32>
    %67 = arith.mulf %63, %66 : vector<144x8xf32>
    %cst_66 = arith.constant dense<0.000000e+00> : vector<8xf32>
    %68 = vector.multi_reduction <add>, %67, %cst_66 [0] : vector<144x8xf32> to vector<8xf32>
    %69 = vector.shape_cast %68 : vector<8xf32> to vector<1x8xf32>
    %70 = arith.addf %64, %69 : vector<1x8xf32>
    %c0_67 = arith.constant 0 : index
    %c0_68 = arith.constant 0 : index
    %71 = vector.load %arg10[%c0_67, %c0_68] : memref<1x8xf32, #tpu.memory_space<vmem>>, vector<1x8xf32>
    tpu.vector_store %arg10[%c0_67, %c0_68], %70 {strides = array<i32>} : memref<1x8xf32, #tpu.memory_space<vmem>>, vector<1x8xf32>,
    %c1_i32 = arith.constant 1 : i32
    %72 = arith.cmpi eq, %arg1, %c1_i32 : i32
    %73 = arith.extui %72 : i1 to i32
    %c0_i32_69 = arith.constant 0 : i32
    %74 = arith.cmpi ne, %73, %c0_i32_69 : i32
    scf.if %74 {
      %c0_70 = arith.constant 0 : index
      %c0_71 = arith.constant 0 : index
      %75 = vector.load %arg10[%c0_70, %c0_71] : memref<1x8xf32, #tpu.memory_space<vmem>>, vector<1x8xf32>
      %c0_72 = arith.constant 0 : index
      %c0_73 = arith.constant 0 : index
      %76 = vector.load %arg7[%c0_72, %c0_73] : memref<1x8xf32, #tpu.memory_space<vmem>>, vector<1x8xf32>
      %77 = arith.mulf %75, %76 : vector<1x8xf32>
      %cst_74 = arith.constant dense<0.000000e+00> : vector<1xf32>
      %78 = vector.multi_reduction <add>, %77, %cst_74 [1] : vector<1x8xf32> to vector<1xf32>
      %79 = vector.shape_cast %78 : vector<1xf32> to vector<1x1xf32>
      %c0_75 = arith.constant 0 : index
      %c0_76 = arith.constant 0 : index
      %80 = vector.load %arg8[%c0_75, %c0_76] : memref<1x1xf32, #tpu.memory_space<vmem>>, vector<1x1xf32>
      %81 = arith.addf %79, %80 : vector<1x1xf32>
      %c0_77 = arith.constant 0 : index
      %c0_78 = arith.constant 0 : index
      %c0_79 = arith.constant 0 : index
      %82 = vector.load %arg9[%c0_77, %c0_78, %c0_79] : memref<1x1x1xf32, #tpu.memory_space<vmem>>, vector<1x1x1xf32>
      %83 = vector.shape_cast %82 : vector<1x1x1xf32> to vector<1x1xf32>
      %84 = vector.shape_cast %81 : vector<1x1xf32> to vector<1x1x1xf32>
      tpu.vector_store %arg9[%c0_77, %c0_78, %c0_79], %84 {strides = array<i32>} : memref<1x1x1xf32, #tpu.memory_space<vmem>>, vector<1x1x1xf32>,
    } else {
    }
    return
  }
  func.func @transform_0(%arg0: i32, %arg1: i32) -> (i32, i32, i32, i32) {
    %c0_i32 = arith.constant 0 : i32
    %c0_i32_0 = arith.constant 0 : i32
    %c0_i32_1 = arith.constant 0 : i32
    return %arg0, %arg1, %c0_i32, %c0_i32_0 : i32, i32, i32, i32
  }
  func.func @transform_1(%arg0: i32, %arg1: i32) -> (i32, i32) {
    %c0_i32 = arith.constant 0 : i32
    %c0_i32_0 = arith.constant 0 : i32
    %c0_i32_1 = arith.constant 0 : i32
    return %c0_i32, %c0_i32_0 : i32, i32
  }
  func.func @transform_2(%arg0: i32, %arg1: i32) -> (i32, i32, i32) {
    %c0_i32 = arith.constant 0 : i32
    %c0_i32_0 = arith.constant 0 : i32
    %c0_i32_1 = arith.constant 0 : i32
    %c0_i32_2 = arith.constant 0 : i32
    return %c0_i32, %c0_i32_0, %c0_i32_1 : i32, i32, i32
  }
  func.func @transform_3(%arg0: i32, %arg1: i32) -> (i32, i32) {
    %c0_i32 = arith.constant 0 : i32
    %c0_i32_0 = arith.constant 0 : i32
    %c0_i32_1 = arith.constant 0 : i32
    return %c0_i32, %c0_i32_0 : i32, i32
  }
  func.func @transform_4(%arg0: i32, %arg1: i32) -> (i32, i32) {
    %c0_i32 = arith.constant 0 : i32
    %c0_i32_0 = arith.constant 0 : i32
    %c0_i32_1 = arith.constant 0 : i32
    return %c0_i32, %c0_i32_0 : i32, i32
  }
  func.func @transform_5(%arg0: i32, %arg1: i32) -> (i32, i32) {
    %c0_i32 = arith.constant 0 : i32
    %c0_i32_0 = arith.constant 0 : i32
    %c0_i32_1 = arith.constant 0 : i32
    return %c0_i32, %c0_i32_0 : i32, i32
  }
  func.func @transform_6(%arg0: i32, %arg1: i32) -> (i32, i32) {
    %c0_i32 = arith.constant 0 : i32
    %c0_i32_0 = arith.constant 0 : i32
    %c0_i32_1 = arith.constant 0 : i32
    return %c0_i32, %c0_i32_0 : i32, i32
  }
  func.func @transform_7(%arg0: i32, %arg1: i32) -> (i32, i32, i32) {
    %c0_i32 = arith.constant 0 : i32
    %c0_i32_0 = arith.constant 0 : i32
    %c0_i32_1 = arith.constant 0 : i32
    return %arg0, %c0_i32, %c0_i32_0 : i32, i32, i32
  }
}

</mosaic_0001>

<bundles_post_ra>
// kernel: tpu_custom_call.1
= control target key start
LH: loop header
LB: loop body
LE: loop exit
PB: predicated region body
PF: predicated region fallthrough
CT: control target
= control target key end

     0   :  { %s3567_s26 = smov 0   ;;  %s3569_s27 = smov 0   ;;  %s4360_s0 = inlined_call_operand.vmem [shape: bf16[2,2,198,8], index: 0, kind: input, shape index: {}]   ;;  %s4361_s1 = inlined_call_operand.vmem [shape: f32[144,1], index: 1, kind: input, shape index: {}]   ;;  %s4362_s2 = inlined_call_operand.vmem [shape: bf16[9,8,8], index: 2, kind: input, shape index: {}]   ;;  %s4363_s3 = inlined_call_operand.vmem [shape: f32[1,8], index: 3, kind: input, shape index: {}]   ;;  %s4364_s4 = inlined_call_operand.vmem [shape: f32[1,8], index: 4, kind: input, shape index: {}]   ;;  %s4365_s5 = inlined_call_operand.vmem [shape: f32[1,8], index: 5, kind: input, shape index: {}]   ;;  %s4366_s6 = inlined_call_operand.<no memory space> [shape: f32[1,1], index: 6, kind: input, shape index: {}]   ;;  %s4367_s7 = inlined_call_operand.vmem [shape: f32[2,1,1], index: 7, kind: output, shape index: {}]  }
   0x1   :  { %v12_v0 = vstv %s4366_s6  ;;  %s3571_s28 = smov 0   ;;  %s3573_s29 = smov 0  }
   0x2   :  { %13 = vst [vmem:[#allocation3] sm:$0x1] %v12_v0  ;;  %s3575_s30 = smov 0  }
   0x3 LB: > { %s28_s6 = sadd.s32 1, %s3510_s28  ;;  %s31_s8 = sadd.s32 1, %s3514_s29  ;;  %s3518_s30 = sphi %s3575_s30, %s19_s30   ;;  %s3514_s29 = sphi %s3573_s29, %s4371_s29   ;;  %s3510_s28 = sphi %s3571_s28, %s4370_s28   ;;  %s3506_s27 = sphi %s3569_s27, %s4369_s27   ;;  %s3502_s26 = sphi %s3567_s26, %s4368_s26  }
   0x4   : > { %p29_p0 = scmp.ge.s32.totalorder %s28_s6, 2  ;;  %p2561_p1 = scmp.ge.s32.totalorder %s3518_s30, 1 }
   0x5   : > { %p257_p2 = scmp.lt.s32.totalorder %s3518_s30, 5 }
   0x6   : > { %s4373_s6 = smov (%p29_p0, %s28_s6), 0  ;;  %s4375_s8 = smov (!%p29_p0, %s31_s8), %s3514_s29 }
   0x7   : > { %p258_p3 = pnand %p2561_p1, %p257_p2  ;;  %p33_p4 = scmp.ge.s32.totalorder %s4375_s8, 2 }
   0x8   : > { %p291_p5 = scmp.lt.s32.totalorder (!%p258_p3), %s3506_s27, 1  ;;  %p293_p6 = scmp.lt.s32.totalorder (!%p258_p3), %s3502_s26, 1 }
   0x9   : > { %s4377_s8 = smov (%p33_p4, %s4375_s8), 0  ;;  %261 = sbr.rel (%p258_p3) target bundleno = 758 (0x2f6), region = 48 }
   0xa   : > { %p2563_p7 = scmp.ne.s32.totalorder (!%p258_p3), %s3502_s26, 0 }
  0x10   : > { %s4379_s27 = smov (!%p291_p5, %s3506_s27), 1  ;;  %vm308_vm0 = vcmask (!%p2563_p7), 57344   ;;  %v3520_v1 = vmov (!%p2563_p7), 0.0  }
  0x11   : > { %s294_s9 = scalar_select %p293_p6, %s3502_s26, 1 }
  0x12   : > { %s3398_s10 = smul.u32 50, %s4379_s27  ;;  %s302_s13 = scalar_lea.vmem %s4367_s7, %s4379_s27  ;;  %309 = vst.msk [vmem:[#allocation2] sm:$0x1] (!%p2563_p7), %vm308_vm0, %v3520_v1 }
  0x13   : > { %s3397_s14 = smul.u32 25, %s294_s9 }
  0x14   : > { %307 = sbr.rel (%p2563_p7) target bundleno = 27 (0x1b), region = 52 }
  0x15   : > { %s297_s15 = sadd.s32 %s3398_s10, %s3397_s14 }
  0x16   : > { %s2562_s16 = sshll.u32 %s297_s15, 2 }
  0x17   : > { %s3611_s19 = scalar_lea.vmem %s4360_s0, %s2562_s16 }
  0x1b PF: > { %vm485_vm1 = vcmask 1043456   ;;  %v2624_v2 = vld [vmem:[%s4362_s2 + $0x10] sm:$0xf]  ;;  %v2564_v3 = vld [vmem:[%s4362_s2 + $0x4] sm:$0xf]  ;;  %v3521_v4 = vmov 0.0  }
  0x1c   : > { %2935 = vmatprep.subr.bf16.mxu0 %v3521_v4  ;;  %2783 = vmatprep.subr.bf16.mxu1 %v3521_v4  ;;  %v3623_v5 = vsel %vm485_vm1, %v2624_v2, 0  ;;  %v487_v6 = vsel %vm485_vm1, %v2564_v3, 0  ;;  %v310_v7 = vld [vmem:[%s3611_s19] sm:$0xf]  ;;  %v3628_v8 = vld [vmem:[%s3611_s19 + $0x8] sm:$0xff]   ;;  %vm3522_vm2 = vmmov 0  }
  0x1d   : > { %2936 = vmatpush3.bf16.msra.mxu0 %v3623_v5  ;;  %2784 = vmatpush3.bf16.msra.mxu1 %v487_v6  ;;  %v3632_v9 = vld [vmem:[%s3611_s19 + $0x4] sm:$0xf]  ;;  %v389_v11 = vshll.u32 %v3628_v8, 16  ;;  %v899_v12 = vld [vmem:[%s3611_s19 + $0x8] sm:$0xe]  ;;  %v3654_v17 = vld [vmem:[%s3611_s19 + $0x10] sm:$0xff]  }
  0x1e   : > { %2785 = vmatprep.mubr.msk.bf16.mxu1 %vm3522_vm2, %v3521_v4  ;;  %2937 = vmatprep.mubr.msk.bf16.mxu0 %vm3522_vm2, %v3521_v4  ;;  %v3639_v10 = vcombine.low %v310_v7, %v3632_v9  ;;  %v3645_v13 = vld [vmem:[%s3611_s19 + $0xc] sm:$0xf]  ;;  %vm380_vm3 = vsmask.f32 7424  ;;  %vm457_vm4 = vcmask 64512   ;;  %v3657_v19 = vld [vmem:[%s3611_s19 + $0x10] sm:$0xff]  }
  0x1f   : > { %2973 = vmatprep.subr.bf16.mxu0 %v3521_v4  ;;  %2821 = vmatprep.subr.bf16.mxu1 %v3521_v4  ;;  %v3651_v16 = vcombine.low %v899_v12, %v3645_v13  ;;  %v391_v18 = vrot.slane %v389_v11, 1  ;;  %v1156_v23 = vshrl.u32 %v3654_v17, 16  ;;  %v2635_v24 = vld [vmem:[%s4362_s2 + $0x14] sm:$0xf]  ;;  %v1159_v25 = vshll.u32 %v3654_v17, 16  ;;  %v3672_v29 = vld [vmem:[%s3611_s19 + $0x18] sm:$0xff]  }
  0x20   : > { %v382_v14 = vshrl.u32 %v3639_v10, 16  ;;  %v384_v15 = vshll.u32 %v3639_v10, 16  ;;  %v393_v26 = vshrl.u32 %v3628_v8, 16  ;;  %v397_v27 = vshll.u32 %v3657_v19, 16  ;;  %v328_v28 = vld [vmem:[%s4362_s2] sm:$0xf] }
  0x21   : > { %v1148_v21 = vshrl.u32 %v3651_v16, 16  ;;  %v1151_v22 = vshll.u32 %v3651_v16, 16  ;;  %v1158_v33 = vrot.slane %v1156_v23, 1  ;;  %vm1146_vm5 = vsmask.f32 6400  ;;  %v3681_v42 = vld [vmem:[%s3611_s19 + $0x20] sm:$0xff]  }
  0x22   : > { %v386_v20 = vrot.slane %v384_v15, 1  ;;  %v1161_v34 = vrot.slane %v1159_v25, 2  ;;  %v613_v35 = vsel %vm485_vm1, %v328_v28, 0  ;;  %v1165_v38 = vshrl.u32 %v3672_v29, 16  ;;  %v3686_v47 = vld [vmem:[%s3611_s19 + $0x18] sm:$0xff]   ;;  %v3702_v58 = vld [vmem:[%s3611_s19 + $0x28] sm:$0xff]  }
  0x23   : > { %v1150_v31 = vrot.slane %v1148_v21, 1  ;;  %v1153_v32 = vrot.slane %v1151_v22, 2  ;;  %v1168_v39 = vshll.u32 %v3672_v29, 16  ;;  %v1443_v41 = vsel %vm485_vm1, %v2635_v24, 0  ;;  %v3707_v61 = vld [vmem:[%s3611_s19 + $0x20] sm:$0xff]   ;;  %v3720_v12 = vld [vmem:[%s3611_s19 + $0x30] sm:$0xff]  }
  0x24   : > { %v387_v30 = vor.u32 %v386_v20, %v382_v14  ;;  %v1162_v40 = vor.u32 %v1161_v34, %v1158_v33  ;;  %v395_v43 = vor.u32 %v393_v26, %v391_v18  ;;  %v399_v44 = vrot.slane %v397_v27, 1  ;;  %v1389_v34 = vld [vmem:[%s3611_s19 + $0x8] sm:$0xc]  ;;  %p2690_p8 = scmp.ne.s32.totalorder %s3502_s26, 1 }
  0x25   : > { %v1154_v37 = vor.u32 %v1153_v32, %v1150_v31  ;;  %v1167_v45 = vrot.slane %v1165_v38, 1  ;;  %v1170_v46 = vrot.slane %v1168_v39, 2  ;;  %v1174_v50 = vshrl.u32 %v3681_v42, 16  ;;  %v3740_v32 = vld [vmem:[%s3611_s19 + $0x30] sm:$0xff]  }
  0x26   : > { %v392_v36 = vsel %vm380_vm3, %v387_v30, %v391_v18  ;;  %v1177_v51 = vshll.u32 %v3681_v42, 16  ;;  %v400_v52 = vsel %vm380_vm3, %v395_v43, %v399_v44  ;;  %v401_v53 = vshrl.u32 %v3657_v19, 16  ;;  %v3725_v18 = vld [vmem:[%s3611_s19 + $0x28] sm:$0xff]   ;;  %v3758_v43 = vld [vmem:[%s3611_s19 + $0x38] sm:$0xff]  }
  0x27   : > { %2786 = vmatmul.mubr.msk.bf16.vlgmr.msra.gmra.mrb[0].mxu1 %vm457_vm4, %v392_v36  ;;  %v1163_v48 = vsel %vm1146_vm5, %v1154_v37, %v1162_v40  ;;  %v1171_v49 = vor.u32 %v1170_v46, %v1167_v45  ;;  %v405_v54 = vshll.u32 %v3686_v47, 16  ;;  %v1176_v56 = vrot.slane %v1174_v50, 1 }
  0x28   : > { %2789 = vmatprep.mubr.msk.bf16.mxu1 %vm3522_vm2, %v3521_v4  ;;  %2822 = vmatpush3.bf16.msra.mxu1 %v613_v35  ;;  %v1179_v57 = vrot.slane %v1177_v51, 2  ;;  %v403_v59 = vor.u32 %v401_v53, %v399_v44  ;;  %v1183_v63 = vshrl.u32 %v3702_v58, 16  ;;  %v1186_v0 = vshll.u32 %v3702_v58, 16 }
  0x29   : > { %2859 = vmatprep.subr.bf16.mxu1 %v3521_v4  ;;  %2938 = vmatmul.mubr.msk.bf16.vlgmr.msra.gmra.mrb[0].mxu0 %vm457_vm4, %v1163_v48  ;;  %v1172_v55 = vsel %vm1146_vm5, %v1162_v40, %v1171_v49  ;;  %v407_v60 = vrot.slane %v405_v54, 1  ;;  %v409_v2 = vshrl.u32 %v3686_v47, 16  ;;  %v413_v3 = vshll.u32 %v3707_v61, 16  ;;  %v3776_v54 = vld [vmem:[%s3611_s19 + $0x40] sm:$0xff]  }
  0x2a   : > { %2974 = vmatpush3.bf16.msra.mxu0 %v1443_v41  ;;  %2941 = vmatprep.mubr.msk.bf16.mxu0 %vm3522_vm2, %v3521_v4  ;;  %v1180_v62 = vor.u32 %v1179_v57, %v1176_v56  ;;  %v1185_v7 = vrot.slane %v1183_v63, 1  ;;  %v1188_v11 = vrot.slane %v1186_v0, 2  ;;  %v1192_v21 = vshrl.u32 %v3720_v12, 16  ;;  %v3791_v0 = vld [vmem:[%s3611_s19 + $0x48] ss:$0 sps:$4 sm:$0x11]  }
  0x2b   : > { %3011 = vmatprep.subr.bf16.mxu0 %v3521_v4  ;;  %v408_v1 = vsel %vm380_vm3, %v403_v59, %v407_v60  ;;  %v411_v14 = vor.u32 %v409_v2, %v407_v60  ;;  %v415_v15 = vrot.slane %v413_v3, 1  ;;  %v1195_v22 = vshll.u32 %v3720_v12, 16 }
  0x2c   : > { %v1181_v6 = vsel %vm1146_vm5, %v1171_v49, %v1180_v62  ;;  %v1189_v20 = vor.u32 %v1188_v11, %v1185_v7  ;;  %v417_v24 = vshrl.u32 %v3707_v61, 16  ;;  %v421_v25 = vshll.u32 %v3725_v18, 16  ;;  %v2646_v49 = vld [vmem:[%s4362_s2 + $0x18] sm:$0xf] }
  0x2d   : > { %v416_v23 = vsel %vm380_vm3, %v411_v14, %v415_v15  ;;  %v1194_v27 = vrot.slane %v1192_v21, 1  ;;  %v1197_v28 = vrot.slane %v1195_v22, 2  ;;  %v425_v36 = vshrl.u32 %v3725_v18, 16  ;;  %v2593_v22 = vld [vmem:[%s4362_s2 + $0x8] sm:$0xf] }
  0x2e   : > { %v1190_v26 = vsel %vm1146_vm5, %v1180_v62, %v1189_v20  ;;  %v419_v30 = vor.u32 %v417_v24, %v415_v15  ;;  %v423_v31 = vrot.slane %v421_v25, 1  ;;  %v429_v37 = vshll.u32 %v3740_v32, 16 }
  0x2f   : > { %2790 = vmatmul.mubr.msk.bf16.gmra.mrb[4].mxu1 %vm457_vm4, %v400_v52  ;;  %v3745_v33 = vor.u32 %v1197_v28, %v1194_v27  ;;  %v2636_v39 = vcombine.low %v1389_v34, %v3645_v13  ;;  %v1397_v45 = vrot.slane %v3654_v17, 2  ;;  %vm1395_vm6 = vcmask 1045504   ;;  %v3838_v28 = vld [vmem:[%s3611_s19 + $0x40] sm:$0xff]   ;;  %v3850_v34 = vld [vmem:[%s3611_s19 + $0x48] sm:$0xff]  }
  0x30   : > { %2793 = vmatprep.mubr.msk.bf16.mxu1 %vm3522_vm2, %v3521_v4  ;;  %v424_v35 = vsel %vm380_vm3, %v419_v30, %v423_v31  ;;  %v427_v40 = vor.u32 %v425_v36, %v423_v31  ;;  %v431_v41 = vrot.slane %v429_v37, 1  ;;  %v433_v13 = vshrl.u32 %v3740_v32, 16  ;;  %v3862_v37 = vld [vmem:[%s3611_s19 + $0x50] ss:$0 sps:$4 sm:$0x33]  }
  0x31   : > { %2942 = vmatmul.mubr.msk.bf16.gmra.mrb[4].mxu0 %vm457_vm4, %v1172_v55  ;;  %v1199_v38 = vsel %vm1146_vm5, %v1189_v20, %v3745_v33  ;;  %v1396_v44 = vrot.slane %v2636_v39, 2  ;;  %v437_v48 = vshll.u32 %v3758_v43, 16  ;;  %v1684_v51 = vsel %vm485_vm1, %v2646_v49, 0  ;;  %v1568_v39 = vld [vmem:[%s3611_s19 + $0x10] sm:$0xc] }
  0x32   : > { %2945 = vmatprep.mubr.msk.bf16.mxu0 %vm3522_vm2, %v3521_v4  ;;  %v432_v46 = vsel %vm380_vm3, %v427_v40, %v431_v41  ;;  %v435_v52 = vor.u32 %v433_v13, %v431_v41  ;;  %v1399_v55 = vrot.slane %v3672_v29, 2  ;;  %v441_v57 = vshrl.u32 %v3758_v43, 16  ;;  %v3872_v40 = vld [vmem:[%s3611_s19 + $0x14] sm:$0xf] }
  0x33   : > { %v1398_v50 = vsel %vm1395_vm6, %v1396_v44, %v1397_v45  ;;  %v439_v53 = vrot.slane %v437_v48, 1  ;;  %v445_v59 = vshll.u32 %v3776_v54, 16  ;;  %v449_v3 = vshrl.u32 %v3776_v54, 16  ;;  %v2666_v48 = vld [vmem:[%s4362_s2 + $0x1c] sm:$0xf] }
  0x34   : > { %v1400_v60 = vsel %vm1395_vm6, %v1397_v45, %v1399_v55  ;;  %v1403_v15 = vrot.slane %v3702_v58, 2  ;;  %v774_v24 = vsel %vm485_vm1, %v2593_v22, 0  ;;  %v1409_v30 = vrot.slane %v3838_v28, 2  ;;  %v3881_v45 = vld [vmem:[%s3611_s19 + $0x18] sm:$0xff]  }
  0x35   : > { %v440_v56 = vsel %vm380_vm3, %v435_v52, %v439_v53  ;;  %v443_v62 = vor.u32 %v441_v57, %v439_v53  ;;  %v447_v63 = vrot.slane %v445_v59, 1  ;;  %v3878_v44 = vcombine.low %v1568_v39, %v3872_v40  ;;  %v3923_v59 = vld [vmem:[%s3611_s19 + $0x30] sm:$0xff]  }
  0x36   : > { %v1638_v13 = vrot.slane %v3881_v45, 2  ;;  %vm726_vm7 = vcmask 1046528   ;;  %v736_v39 = vrot.slane %v3725_v18, 1  ;;  %vm1815_vm8 = vsmask.f32 5376 }
  0x37   : > { %2794 = vmatmul.mubr.msk.bf16.gmra.mrb[8].mxu1 %vm457_vm4, %v408_v1  ;;  %v1401_v1 = vrot.slane %v3681_v42, 2  ;;  %v448_v2 = vsel %vm380_vm3, %v443_v62, %v447_v63  ;;  %v451_v11 = vor.u32 %v449_v3, %v447_v63  ;;  %v1644_v62 = vrot.slane %v3923_v59, 2 }
  0x38   : > { %2797 = vmatprep.mubr.msk.bf16.mxu1 %vm3522_vm2, %v3521_v4  ;;  %vm2064_vm9 = vcmask 1044480   ;;  %vm2474_vm10 = vcmask 57344   ;;  %vm2488_vm11 = vcmask (!%p2690_p8), 0  }
  0x39   : > { %2946 = vmatmul.mubr.msk.bf16.gmra.mrb[8].mxu0 %vm457_vm4, %v1181_v6  ;;  %v453_v6 = vshll.u32 %v3791_v0, 16  ;;  %v1402_v7 = vsel %vm1395_vm6, %v1399_v55, %v1401_v1  ;;  %v1404_v21 = vsel %vm1395_vm6, %v1401_v1, %v1403_v15  ;;  %v3911_v55 = vld [vmem:[%s3611_s19 + $0x28] sm:$0xff]  }
  0x3a   : > { %2949 = vmatprep.mubr.msk.bf16.mxu0 %vm3522_vm2, %v3521_v4 }
  0x3b   : > { %v455_v14 = vrot.slane %v453_v6, 1  ;;  %v728_v6 = vrot.slane %v3628_v8, 1 }
  0x3d   : > { %v456_v20 = vsel %vm380_vm3, %v451_v11, %v455_v14 }
  0x3f   : > { %2798 = vmatmul.mubr.msk.bf16.gmra.mrb[12].mxu1 %vm457_vm4, %v416_v23  ;;  %v1405_v23 = vrot.slane %v3720_v12, 2 }
  0x40   : > { %2801 = vmatprep.mubr.msk.bf16.mxu1 %vm3522_vm2, %v3521_v4 }
  0x41   : > { %2950 = vmatmul.mubr.msk.bf16.gmra.mrb[12].mxu0 %vm457_vm4, %v1190_v26  ;;  %v1406_v25 = vsel %vm1395_vm6, %v1403_v15, %v1405_v23  ;;  %v3825_v26 = vld [vmem:[%s3611_s19 + $0x38] sm:$0xff]   ;;  %v3954_v15 = vld [vmem:[%s3611_s19 + $0x40] sm:$0xff]  }
  0x42   : > { %2953 = vmatprep.mubr.msk.bf16.mxu0 %vm3522_vm2, %v3521_v4  ;;  %v1407_v27 = vrot.slane %v3825_v26, 2 }
  0x44   : > { %v1410_v31 = vsel %vm1395_vm6, %v1407_v27, %v1409_v30 }
  0x47   : > { %2802 = vmatmul.mubr.msk.bf16.gmra.mrb[16].mxu1 %vm457_vm4, %v424_v35  ;;  %v1411_v35 = vrot.slane %v3850_v34, 2 }
  0x48   : > { %2805 = vmatprep.mubr.msk.bf16.mxu1 %vm3522_vm2, %v3521_v4 }
  0x49   : > { %2954 = vmatmul.mubr.msk.bf16.gmra.mrb[16].mxu0 %vm457_vm4, %v1199_v38  ;;  %v1412_v36 = vsel %vm1395_vm6, %v1409_v30, %v1411_v35  ;;  %v1413_v38 = vrot.slane %v3862_v37, 2  ;;  %v3981_v30 = vld [vmem:[%s3611_s19 + $0x50] sm:$0xff]  }
  0x4a   : > { %2975 = vmatprep.mubr.msk.bf16.mxu0 %vm3522_vm2, %v3521_v4 }
  0x4b   : > { %v1414_v41 = vsel %vm1395_vm6, %v1411_v35, %v1413_v38 }
  0x4f   : > { %2806 = vmatmul.mubr.msk.bf16.gmra.mrb[20].mxu1 %vm457_vm4, %v432_v46  ;;  %v1637_v46 = vrot.slane %v3878_v44, 2 }
  0x50   : > { %2809 = vmatprep.mubr.msk.bf16.mxu1 %vm3522_vm2, %v3521_v4 }
  0x51   : > { %2976 = vmatmul.mubr.msk.bf16.vlgmr.msra.gmra.mrb[0].mxu0 %vm457_vm4, %v1398_v50  ;;  %v1639_v49 = vsel %vm1395_vm6, %v1637_v46, %v1638_v13  ;;  %v3897_v50 = vld [vmem:[%s3611_s19 + $0x20] sm:$0xff]   ;;  %v1820_v46 = vshll.u32 %v3878_v44, 16 }
  0x52   : > { %3012 = vmatpush3.bf16.msra.mxu0 %v1684_v51  ;;  %2979 = vmatprep.mubr.msk.bf16.mxu0 %vm3522_vm2, %v3521_v4  ;;  %v1933_v51 = vsel %vm485_vm1, %v2666_v48, 0  ;;  %v1640_v52 = vrot.slane %v3897_v50, 2  ;;  %v1828_v48 = vshll.u32 %v3881_v45, 16 }
  0x53   : > { %3049 = vmatprep.subr.bf16.mxu0 %v3521_v4 }
  0x54   : > { %v1641_v53 = vsel %vm1395_vm6, %v1638_v13, %v1640_v52  ;;  %v1825_v13 = vshrl.u32 %v3881_v45, 16 }
  0x57   : > { %2810 = vmatmul.mubr.msk.bf16.gmra.mrb[24].mxu1 %vm457_vm4, %v440_v56  ;;  %v1642_v56 = vrot.slane %v3911_v55, 2 }
  0x58   : > { %2813 = vmatprep.mubr.msk.bf16.mxu1 %vm3522_vm2, %v3521_v4 }
  0x59   : > { %2980 = vmatmul.mubr.msk.bf16.gmra.mrb[4].mxu0 %vm457_vm4, %v1400_v60  ;;  %v1643_v57 = vsel %vm1395_vm6, %v1640_v52, %v1642_v56  ;;  %v720_v60 = vld [vmem:[%s3611_s19] sm:$0xe]  ;;  %v1645_v1 = vsel %vm1395_vm6, %v1642_v56, %v1644_v62  ;;  %v1822_v52 = vrot.slane %v1820_v46, 3  ;;  %v1830_v56 = vrot.slane %v1828_v48, 3  ;;  %v2311_v48 = vld [vmem:[%s4361_s1 + $0x28] sm:$0xff] }
  0x5a   : > { %2983 = vmatprep.mubr.msk.bf16.mxu0 %vm3522_vm2, %v3521_v4  ;;  %v2594_v63 = vcombine.low %v720_v60, %v3632_v9  ;;  %v2604_v9 = vld [vmem:[%s4362_s2 + $0xc] sm:$0xf]  ;;  %v744_v46 = vrot.slane %v3791_v0, 1 }
  0x5b   : > { %v1015_v14 = vsel %vm485_vm1, %v2604_v9, 0 }
  0x5c   : > { %v727_v3 = vrot.slane %v2594_v63, 1  ;;  %v1837_v63 = vshll.u32 %v3897_v50, 16 }
  0x5e   : > { %v729_v11 = vsel %vm726_vm7, %v727_v3, %v728_v6  ;;  %v2677_v3 = vld [vmem:[%s4362_s2 + $0x20] sm:$0xf]  ;;  %v1839_v9 = vrot.slane %v1837_v63, 3 }
  0x5f   : > { %2814 = vmatmul.mubr.msk.bf16.gmra.mrb[28].mxu1 %vm457_vm4, %v448_v2  ;;  %v3937_v2 = vld [vmem:[%s3611_s19 + $0x38] sm:$0xff]   ;;  %v2314_v63 = vld [vmem:[%s4361_s1 + $0x40] sm:$0xff] }
  0x60   : > { %2817 = vmatprep.mubr.msk.bf16.mxu1 %vm3522_vm2, %v3521_v4  ;;  %v1864_v0 = vshll.u32 %v3937_v2, 16 }
  0x61   : > { %2984 = vmatmul.mubr.msk.bf16.gmra.mrb[8].mxu0 %vm457_vm4, %v1402_v7  ;;  %v1646_v7 = vrot.slane %v3937_v2, 2 }
  0x62   : > { %2987 = vmatprep.mubr.msk.bf16.mxu0 %vm3522_vm2, %v3521_v4 }
  0x67   : > { %2818 = vmatmul.mubr.msk.bf16.gmra.mrb[32].mxu1 %vm457_vm4, %v456_v20  ;;  %v730_v20 = vrot.slane %v3657_v19, 1 }
  0x68   : > { %2823 = vmatprep.mubr.msk.bf16.mxu1 %vm3522_vm2, %v3521_v4 }
  0x69   : > { %2988 = vmatmul.mubr.msk.bf16.gmra.mrb[12].mxu0 %vm457_vm4, %v1404_v21  ;;  %v1648_v21 = vrot.slane %v3954_v15, 2  ;;  %v731_v22 = vsel %vm726_vm7, %v728_v6, %v730_v20 }
  0x6a   : > { %2991 = vmatprep.mubr.msk.bf16.mxu0 %vm3522_vm2, %v3521_v4 }
  0x6f   : > { %2824 = vmatmul.mubr.msk.bf16.vlgmr.msra.gmra.mrb[0].mxu1 %vm457_vm4, %v3639_v10  ;;  %v1408_v10 = vsel %vm1395_vm6, %v1405_v23, %v1407_v27  ;;  %v1649_v23 = vsel %vm1395_vm6, %v1646_v7, %v1648_v21 }
  0x70   : > { %2827 = vmatprep.mubr.msk.bf16.mxu1 %vm3522_vm2, %v3521_v4  ;;  %2860 = vmatpush3.bf16.msra.mxu1 %v774_v24  ;;  %v3968_v24 = vld [vmem:[%s3611_s19 + $0x48] sm:$0xff]  }
  0x71   : > { %2897 = vmatprep.subr.bf16.mxu1 %v3521_v4  ;;  %2992 = vmatmul.mubr.msk.bf16.gmra.mrb[16].mxu0 %vm457_vm4, %v1406_v25  ;;  %v1650_v25 = vrot.slane %v3968_v24, 2 }
  0x72   : > { %2995 = vmatprep.mubr.msk.bf16.mxu0 %vm3522_vm2, %v3521_v4 }
  0x77   : > { %2828 = vmatmul.mubr.msk.bf16.gmra.mrb[4].mxu1 %vm457_vm4, %v3628_v8  ;;  %v1647_v8 = vsel %vm1395_vm6, %v1644_v62, %v1646_v7  ;;  %v1834_v62 = vshrl.u32 %v3897_v50, 16  ;;  %v2112_v7 = vsel %vm485_vm1, %v2677_v3, 0 }
  0x78   : > { %2831 = vmatprep.mubr.msk.bf16.mxu1 %vm3522_vm2, %v3521_v4 }
  0x79   : > { %2996 = vmatmul.mubr.msk.bf16.gmra.mrb[20].mxu0 %vm457_vm4, %v1408_v10  ;;  %v1651_v10 = vsel %vm1395_vm6, %v1648_v21, %v1650_v25  ;;  %v1836_v6 = vrot.slane %v1834_v62, 2  ;;  %v969_v62 = vrot.slane %v3654_v17, 1  ;;  %v1873_v17 = vshll.u32 %v3954_v15, 16 }
  0x7a   : > { %2999 = vmatprep.mubr.msk.bf16.mxu0 %vm3522_vm2, %v3521_v4 }
  0x7f   : > { %2832 = vmatmul.mubr.msk.bf16.gmra.mrb[8].mxu1 %vm457_vm4, %v3657_v19  ;;  %v732_v19 = vrot.slane %v3686_v47, 1 }
  0x80   : > { %2835 = vmatprep.mubr.msk.bf16.mxu1 %vm3522_vm2, %v3521_v4 }
  0x81   : > { %3000 = vmatmul.mubr.msk.bf16.gmra.mrb[24].mxu0 %vm457_vm4, %v1410_v31  ;;  %v733_v27 = vsel %vm726_vm7, %v730_v20, %v732_v19  ;;  %v1652_v31 = vrot.slane %v3981_v30, 2  ;;  %v1846_v20 = vshll.u32 %v3911_v55, 16 }
  0x82   : > { %3003 = vmatprep.mubr.msk.bf16.mxu0 %vm3522_vm2, %v3521_v4 }
  0x83   : > { %v1653_v38 = vsel %vm1395_vm6, %v1650_v25, %v1652_v31  ;;  %v2306_v25 = vld [vmem:[%s4361_s1] sm:$0xff] }
  0x87   : > { %2836 = vmatmul.mubr.msk.bf16.gmra.mrb[12].mxu1 %vm457_vm4, %v3686_v47  ;;  %v734_v47 = vrot.slane %v3707_v61, 1 }
  0x88   : > { %2839 = vmatprep.mubr.msk.bf16.mxu1 %vm3522_vm2, %v3521_v4 }
  0x89   : > { %3004 = vmatmul.mubr.msk.bf16.gmra.mrb[28].mxu0 %vm457_vm4, %v1412_v36  ;;  %v735_v35 = vsel %vm726_vm7, %v732_v19, %v734_v47  ;;  %v3476_v36 = vld [vmem:[%s3611_s19 + $0x58] ss:$0 sps:$4 sm:$0x33]   ;;  %v1848_v19 = vrot.slane %v1846_v20, 3  ;;  %v2318_v20 = vld [vmem:[%s4361_s1 + $0x60] sm:$0xff] }
  0x8a   : > { %3007 = vmatprep.mubr.msk.bf16.mxu0 %vm3522_vm2, %v3521_v4 }
  0x8f   : > { %2840 = vmatmul.mubr.msk.bf16.gmra.mrb[16].mxu1 %vm457_vm4, %v3707_v61  ;;  %v1654_v61 = vrot.slane %v3476_v36, 2  ;;  %v2307_v36 = vld [vmem:[%s4361_s1 + $0x8] sm:$0xff] }
  0x90   : > { %2843 = vmatprep.mubr.msk.bf16.mxu1 %vm3522_vm2, %v3521_v4 }
  0x91   : > { %3008 = vmatmul.mubr.msk.bf16.gmra.mrb[32].mxu0 %vm457_vm4, %v1414_v41  ;;  %v1817_v41 = vshrl.u32 %v3878_v44, 16 }
  0x92   : > { %3013 = vmatprep.mubr.msk.bf16.mxu0 %vm3522_vm2, %v3521_v4 }
  0x97   : > { %2844 = vmatmul.mubr.msk.bf16.gmra.mrb[20].mxu1 %vm457_vm4, %v3725_v18  ;;  %v1819_v18 = vrot.slane %v1817_v41, 2 }
  0x98   : > { %2847 = vmatprep.mubr.msk.bf16.mxu1 %vm3522_vm2, %v3521_v4 }
  0x99   : > { %3014 = vmatmul.mubr.msk.bf16.vlgmr.msra.gmra.mrb[0].mxu0 %vm457_vm4, %v1639_v49  ;;  %v737_v49 = vsel %vm726_vm7, %v734_v47, %v736_v39  ;;  %v1823_v44 = vor.u32 %v1822_v52, %v1819_v18  ;;  %v1852_v47 = vshrl.u32 %v3923_v59, 16  ;;  %v2312_v52 = vld [vmem:[%s4361_s1 + $0x30] sm:$0xff] }
  0x9a   : > { %3050 = vmatpush3.bf16.msra.mxu0 %v1933_v51  ;;  %3017 = vmatprep.mubr.msk.bf16.mxu0 %vm3522_vm2, %v3521_v4  ;;  %v1655_v51 = vsel %vm1395_vm6, %v1652_v31, %v1654_v61  ;;  %v1855_v31 = vshll.u32 %v3923_v59, 16 }
  0x9b   : > { %3087 = vmatprep.subr.bf16.mxu0 %v3521_v4  ;;  %v1854_v61 = vrot.slane %v1852_v47, 2  ;;  %v973_v47 = vrot.slane %v3681_v42, 1  ;;  %v1891_v42 = vshll.u32 %v3981_v30, 16 }
  0x9c   : > { %v1857_v41 = vrot.slane %v1855_v31, 3  ;;  %v2322_v31 = vld [vmem:[%s4361_s1 + $0x80] sm:$0xff] }
  0x9f   : > { %2848 = vmatmul.mubr.msk.bf16.gmra.mrb[24].mxu1 %vm457_vm4, %v3740_v32 }
  0xa0   : > { %2851 = vmatprep.mubr.msk.bf16.mxu1 %vm3522_vm2, %v3521_v4 }
  0xa1   : > { %3018 = vmatmul.mubr.msk.bf16.gmra.mrb[4].mxu0 %vm457_vm4, %v1641_v53  ;;  %v1827_v53 = vrot.slane %v1825_v13, 2  ;;  %v2310_v13 = vld [vmem:[%s4361_s1 + $0x20] sm:$0xff] }
  0xa2   : > { %3021 = vmatprep.mubr.msk.bf16.mxu0 %vm3522_vm2, %v3521_v4 }
  0xa3   : > { %v1831_v60 = vor.u32 %v1830_v56, %v1827_v53  ;;  %v2313_v53 = vld [vmem:[%s4361_s1 + $0x38] sm:$0xff] }
  0xa7   : > { %2852 = vmatmul.mubr.msk.bf16.gmra.mrb[28].mxu1 %vm457_vm4, %v3758_v43 }
  0xa8   : > { %2855 = vmatprep.mubr.msk.bf16.mxu1 %vm3522_vm2, %v3521_v4 }
  0xa9   : > { %3022 = vmatmul.mubr.msk.bf16.gmra.mrb[8].mxu0 %vm457_vm4, %v1643_v57  ;;  %v738_v57 = vrot.slane %v3740_v32, 1  ;;  %v1832_v32 = vsel %vm1815_vm8, %v1823_v44, %v1831_v60  ;;  %v1866_v44 = vrot.slane %v1864_v0, 3 }
  0xaa   : > { %3025 = vmatprep.mubr.msk.bf16.mxu0 %vm3522_vm2, %v3521_v4 }
  0xaf   : > { %2856 = vmatmul.mubr.msk.bf16.gmra.mrb[32].mxu1 %vm457_vm4, %v3776_v54 }
  0xb0   : > { %2861 = vmatprep.mubr.msk.bf16.mxu1 %vm3522_vm2, %v3521_v4 }
  0xb1   : > { %3026 = vmatmul.mubr.msk.bf16.gmra.mrb[12].mxu0 %vm457_vm4, %v1645_v1  ;;  %v739_v1 = vsel %vm726_vm7, %v736_v39, %v738_v57 }
  0xb2   : > { %3029 = vmatprep.mubr.msk.bf16.mxu0 %vm3522_vm2, %v3521_v4 }
  0xb7   : > { %2862 = vmatmul.mubr.msk.bf16.vlgmr.msra.gmra.mrb[0].mxu1 %vm457_vm4, %v729_v11  ;;  %v740_v11 = vrot.slane %v3758_v43, 1  ;;  %v742_v43 = vrot.slane %v3776_v54, 1 }
  0xb8   : > { %2865 = vmatprep.mubr.msk.bf16.mxu1 %vm3522_vm2, %v3521_v4  ;;  %2898 = vmatpush3.bf16.msra.mxu1 %v1015_v14  ;;  %v1840_v14 = vor.u32 %v1839_v9, %v1836_v6  ;;  %v2316_v6 = vld [vmem:[%s4361_s1 + $0x50] sm:$0xff]  ;;  %v2317_v9 = vld [vmem:[%s4361_s1 + $0x58] sm:$0xff] }
  0xb9   : > { %3125 = vmatprep.subr.bf16.mxu1 %v3521_v4  ;;  %3030 = vmatmul.mubr.msk.bf16.gmra.mrb[16].mxu0 %vm457_vm4, %v1647_v8  ;;  %v1843_v8 = vshrl.u32 %v3911_v55, 16  ;;  %v741_v21 = vsel %vm726_vm7, %v738_v57, %v740_v11  ;;  %v743_v54 = vsel %vm726_vm7, %v740_v11, %v742_v43  ;;  %v745_v18 = vsel %vm726_vm7, %v742_v43, %v744_v46  ;;  %v2321_v43 = vld [vmem:[%s4361_s1 + $0x78] sm:$0xff] }
  0xba   : > { %3033 = vmatprep.mubr.msk.bf16.mxu0 %vm3522_vm2, %v3521_v4  ;;  %v4145_v46 = vld [vmem:[%s3611_s19 + $0x58] ss:$0 sps:$4 sm:$0x77]  }
  0xbf   : > { %2866 = vmatmul.mubr.msk.bf16.gmra.mrb[4].mxu1 %vm457_vm4, %v731_v22  ;;  %v1841_v22 = vsel %vm1815_vm8, %v1831_v60, %v1840_v14  ;;  %v968_v60 = vrot.slane %v3651_v16, 1  ;;  %v1870_v16 = vshrl.u32 %v3954_v15, 16 }
  0xc0   : > { %2869 = vmatprep.mubr.msk.bf16.mxu1 %vm3522_vm2, %v3521_v4 }
  0xc1   : > { %3034 = vmatmul.mubr.msk.bf16.gmra.mrb[20].mxu0 %vm457_vm4, %v1649_v23  ;;  %v1845_v23 = vrot.slane %v1843_v8, 2  ;;  %v1872_v11 = vrot.slane %v1870_v16, 2  ;;  %v971_v8 = vrot.slane %v3672_v29, 1  ;;  %v1879_v29 = vshrl.u32 %v3968_v24, 16 }
  0xc2   : > { %3037 = vmatprep.mubr.msk.bf16.mxu0 %vm3522_vm2, %v3521_v4  ;;  %v981_v16 = vrot.slane %v3838_v28, 1 }
  0xc7   : > { %2870 = vmatmul.mubr.msk.bf16.gmra.mrb[8].mxu1 %vm457_vm4, %v733_v27  ;;  %v2308_v27 = vld [vmem:[%s4361_s1 + $0x10] sm:$0xff] }
  0xc8   : > { %2873 = vmatprep.mubr.msk.bf16.mxu1 %vm3522_vm2, %v3521_v4 }
  0xc9   : > { %3038 = vmatmul.mubr.msk.bf16.gmra.mrb[24].mxu0 %vm457_vm4, %v1651_v10  ;;  %v1849_v10 = vor.u32 %v1848_v19, %v1845_v23  ;;  %v972_v23 = vsel %vm726_vm7, %v969_v62, %v971_v8  ;;  %v2320_v19 = vld [vmem:[%s4361_s1 + $0x70] sm:$0xff] }
  0xca   : > { %3041 = vmatprep.mubr.msk.bf16.mxu0 %vm3522_vm2, %v3521_v4 }
  0xcb   : > { %v1850_v39 = vsel %vm1815_vm8, %v1840_v14, %v1849_v10  ;;  %v1875_v14 = vrot.slane %v1873_v17, 3 }
  0xcf   : > { %2874 = vmatmul.mubr.msk.bf16.gmra.mrb[12].mxu1 %vm457_vm4, %v735_v35  ;;  %v3523_v35 = vmov 0  }
  0xd0   : > { %2877 = vmatprep.mubr.msk.bf16.mxu1 %vm3522_vm2, %v3521_v4  ;;  %3443 = vset.pattern.permute.xlu0 %v3523_v35 }
  0xd1   : > { %3042 = vmatmul.mubr.msk.bf16.gmra.mrb[28].mxu0 %vm457_vm4, %v1653_v38  ;;  %2326 = vperm.xlu0 %3443, %v2306_v25   ;;  %v2309_v38 = vld [vmem:[%s4361_s1 + $0x18] sm:$0xff] }
  0xd2   : > { %3045 = vmatprep.mubr.msk.bf16.mxu0 %vm3522_vm2, %v3521_v4  ;;  %3444 = vset.pattern.permute.xlu1 %v3523_v35  ;;  %v2323_v35 = vld [vmem:[%s4361_s1 + $0x88] sm:$0xff] }
  0xd3   : > { %2336 = vperm.xlu1 %3444, %v2308_v27   ;;  %v1881_v27 = vrot.slane %v1879_v29, 2 }
  0xd5   : > { %2331 = vperm.xlu0 %3443, %v2307_v36   ;;  %v1888_v36 = vshrl.u32 %v3981_v30, 16 }
  0xd7   : > { %2878 = vmatmul.mubr.msk.bf16.gmra.mrb[16].mxu1 %vm457_vm4, %v737_v49  ;;  %2341 = vperm.xlu1 %3444, %v2309_v38   ;;  %v1858_v49 = vor.u32 %v1857_v41, %v1854_v61  ;;  %v974_v38 = vsel %vm726_vm7, %v971_v8, %v973_v47  ;;  %v1890_v61 = vrot.slane %v1888_v36, 2  ;;  %v1893_v41 = vrot.slane %v1891_v42, 3 }
  0xd8   : > { %2881 = vmatprep.mubr.msk.bf16.mxu1 %vm3522_vm2, %v3521_v4  ;;  %v1201_v8 = vshrl.u32 %v3825_v26, 16 }
  0xd9   : > { %3046 = vmatmul.mubr.msk.bf16.gmra.mrb[32].mxu0 %vm457_vm4, %v1655_v51  ;;  %v1861_v51 = vshrl.u32 %v3937_v2, 16  ;;  %2346 = vperm.xlu0 %3443, %v2310_v13   ;;  %v1859_v56 = vsel %vm1815_vm8, %v1849_v10, %v1858_v49  ;;  %v975_v13 = vrot.slane %v3702_v58, 1  ;;  %v977_v58 = vrot.slane %v3720_v12, 1 }
  0xda   : > { %3051 = vmatprep.mubr.msk.bf16.mxu0 %vm3522_vm2, %v3521_v4  ;;  %v979_v12 = vrot.slane %v3825_v26, 1 }
  0xdb   : > { %2351 = vperm.xlu1 %3444, %v2311_v48   ;;  %v1863_v57 = vrot.slane %v1861_v51, 2  ;;  %v1894_v48 = vor.u32 %v1893_v41, %v1890_v61  ;;  %v1900_v51 = vshll.u32 %v4145_v46, 16  ;;  %v976_v0 = vsel %vm726_vm7, %v973_v47, %v975_v13 }
  0xdc   : > { %v982_v17 = vsel %vm726_vm7, %v979_v12, %v981_v16  ;;  %v1219_v47 = vshrl.u32 %v3850_v34, 16 }
  0xdd   : > { %2356 = vperm.xlu0 %3443, %v2312_v52   ;;  %v1867_v3 = vor.u32 %v1866_v44, %v1863_v57  ;;  %v978_v57 = vsel %vm726_vm7, %v975_v13, %v977_v58  ;;  %v2058_v44 = vld [vmem:[%s3611_s19 + $0x10] sm:$0x8] }
  0xdf   : > { %2882 = vmatmul.mubr.msk.bf16.gmra.mrb[20].mxu1 %vm457_vm4, %v739_v1  ;;  %2361 = vperm.xlu1 %3444, %v2313_v53   ;;  %v2315_v1 = vld [vmem:[%s4361_s1 + $0x48] sm:$0xff]  ;;  %v1902_v53 = vrot.slane %v1900_v51, 3  ;;  %v2082_v51 = vrot.slane %v4145_v46, 3 }
  0xe0   : > { %2885 = vmatprep.mubr.msk.bf16.mxu1 %vm3522_vm2, %v3521_v4 }
  0xe1   : > { %3052 = vmatmul.mubr.msk.bf16.vlgmr.msra.gmra.mrb[0].mxu0 %vm457_vm4, %v1832_v32  ;;  %v970_v32 = vsel %vm726_vm7, %v968_v60, %v969_v62  ;;  %2366 = vperm.xlu0 %3443, %v2314_v63   ;;  %v2678_v62 = vcombine.low %v2058_v44, %v3872_v40 }
  0xe2   : > { %3088 = vmatpush3.bf16.msra.mxu0 %v2112_v7  ;;  %3055 = vmatprep.mubr.msk.bf16.mxu0 %vm3522_vm2, %v3521_v4  ;;  %v1868_v7 = vsel %vm1815_vm8, %v1858_v49, %v1867_v3  ;;  %v1897_v49 = vshrl.u32 %v4145_v46, 16 }
  0xe3   : > { %2371 = vperm.xlu1 %3444, %v2315_v1   ;;  %v2065_v63 = vrot.slane %v2678_v62, 3  ;;  %v2066_v1 = vrot.slane %v3881_v45, 3  ;;  %v2068_v45 = vrot.slane %v3897_v50, 3 }
  0xe4   : > { %v1899_v52 = vrot.slane %v1897_v49, 2 }
  0xe5   : > { %2376 = vperm.xlu0 %3443, %v2316_v6   ;;  %v2067_v40 = vsel %vm2064_vm9, %v2065_v63, %v2066_v1  ;;  %v983_v6 = vrot.slane %v3850_v34, 1 }
  0xe7   : > { %2886 = vmatmul.mubr.msk.bf16.gmra.mrb[24].mxu1 %vm457_vm4, %v741_v21  ;;  %2381 = vperm.xlu1 %3444, %v2317_v9   ;;  %v2319_v21 = vld [vmem:[%s4361_s1 + $0x68] sm:$0xff]  ;;  %v2070_v9 = vrot.slane %v3911_v55, 3  ;;  %v984_v50 = vsel %vm726_vm7, %v981_v16, %v983_v6  ;;  %v2072_v55 = vrot.slane %v3923_v59, 3  ;;  %v2074_v59 = vrot.slane %v3937_v2, 3 }
  0xe8   : > { %2889 = vmatprep.mubr.msk.bf16.mxu1 %vm3522_vm2, %v3521_v4 }
  0xe9   : > { %3056 = vmatmul.mubr.msk.bf16.gmra.mrb[4].mxu0 %vm457_vm4, %v1841_v22  ;;  %v1876_v22 = vor.u32 %v1875_v14, %v1872_v11  ;;  %2386 = vperm.xlu0 %3443, %v2318_v20   ;;  %v2071_v11 = vsel %vm2064_vm9, %v2068_v45, %v2070_v9  ;;  %v1204_v20 = vshll.u32 %v3825_v26, 16  ;;  %v1210_v26 = vshrl.u32 %v3838_v28, 16 }
  0xea   : > { %3059 = vmatprep.mubr.msk.bf16.mxu0 %vm3522_vm2, %v3521_v4 }
  0xeb   : > { %2391 = vperm.xlu1 %3444, %v2319_v21   ;;  %v1877_v25 = vsel %vm1815_vm8, %v1867_v3, %v1876_v22  ;;  %v980_v3 = vsel %vm726_vm7, %v977_v58, %v979_v12  ;;  %v1206_v29 = vrot.slane %v1204_v20, 2 }
  0xed   : > { %2396 = vperm.xlu0 %3443, %v2320_v19   ;;  %v1213_v19 = vshll.u32 %v3838_v28, 16 }
  0xef   : > { %2890 = vmatmul.mubr.msk.bf16.gmra.mrb[28].mxu1 %vm457_vm4, %v743_v54  ;;  %2401 = vperm.xlu1 %3444, %v2321_v43  }
  0xf0   : > { %2893 = vmatprep.mubr.msk.bf16.mxu1 %vm3522_vm2, %v3521_v4 }
  0xf1   : > { %3060 = vmatmul.mubr.msk.bf16.gmra.mrb[8].mxu0 %vm457_vm4, %v1850_v39  ;;  %2406 = vperm.xlu0 %3443, %v2322_v31   ;;  %v1222_v31 = vshll.u32 %v3850_v34, 16  ;;  %v1228_v34 = vshrl.u32 %v3862_v37, 16 }
  0xf2   : > { %3063 = vmatprep.mubr.msk.bf16.mxu0 %vm3522_vm2, %v3521_v4 }
  0xf3   : > { %2411 = vperm.xlu1 %3444, %v2323_v35   ;;  %v1221_v35 = vrot.slane %v1219_v47, 1  ;;  %v1230_v61 = vrot.slane %v1228_v34, 1 }
  0xf7   : > { %2894 = vmatmul.mubr.msk.bf16.gmra.mrb[32].mxu1 %vm457_vm4, %v745_v18 }
  0xf8   : > { %2899 = vmatprep.mubr.msk.bf16.mxu1 %vm3522_vm2, %v3521_v4 }
  0xf9   : > { %3064 = vmatmul.mubr.msk.bf16.gmra.mrb[12].mxu0 %vm457_vm4, %v1859_v56  ;;  %v1903_v56 = vor.u32 %v1902_v53, %v1899_v52 }
  0xfa   : > { %3067 = vmatprep.mubr.msk.bf16.mxu0 %vm3522_vm2, %v3521_v4 }
  0xfb   : > { %v1904_v60 = vsel %vm1815_vm8, %v1894_v48, %v1903_v56 }
  0xff   : > { %2900 = vmatmul.mubr.msk.bf16.vlgmr.msra.gmra.mrb[0].mxu1 %vm457_vm4, %v970_v32  ;;  %v2069_v32 = vsel %vm2064_vm9, %v2066_v1, %v2068_v45 }
 0x100   : > { %2903 = vmatprep.mubr.msk.bf16.mxu1 %vm3522_vm2, %v3521_v4  ;;  %3126 = vmatpush3.bf16.msra.mxu1 %v3623_v5  ;;  %v1882_v5 = vshll.u32 %v3968_v24, 16 }
 0x101   : > { %3068 = vmatmul.mubr.msk.bf16.gmra.mrb[16].mxu0 %vm457_vm4, %v1868_v7  ;;  %v3479_v7 = vld [vmem:[%s3611_s19 + $0x50] ss:$0 sps:$4 sm:$0x11]  }
 0x102   : > { %3071 = vmatprep.mubr.msk.bf16.mxu0 %vm3522_vm2, %v3521_v4  ;;  %v1884_v10 = vrot.slane %v1882_v5, 3  ;;  %v985_v14 = vrot.slane %v3479_v7, 1  ;;  %v2073_v5 = vsel %vm2064_vm9, %v2070_v9, %v2072_v55 }
 0x104   : > { %v1885_v54 = vor.u32 %v1884_v10, %v1881_v27  ;;  %v986_v21 = vsel %vm726_vm7, %v983_v6, %v985_v14  ;;  %v1215_v27 = vrot.slane %v1213_v19, 2  ;;  %v2075_v10 = vsel %vm2064_vm9, %v2072_v55, %v2074_v59  ;;  %v4271_v6 = vld [vmem:[%s4363_s3] ss:$0 sm:$0xff] }
 0x105   : > { %v4276_v14 = vld [vmem:[%s4364_s4] ss:$0 sm:$0xff] }
 0x106   : > { %v1886_v39 = vsel %vm1815_vm8, %v1876_v22, %v1885_v54  ;;  %v1895_v18 = vsel %vm1815_vm8, %v1885_v54, %v1894_v48  ;;  %v1203_v22 = vrot.slane %v1201_v8, 1  ;;  %v1224_v54 = vrot.slane %v1222_v31, 2 }
 0x107   : > { %2904 = vmatmul.mubr.msk.bf16.gmra.mrb[4].mxu1 %vm457_vm4, %v972_v23 }
 0x108   : > { %2907 = vmatprep.mubr.msk.bf16.mxu1 %vm3522_vm2, %v3521_v4  ;;  %v1207_v23 = vor.u32 %v1206_v29, %v1203_v22  ;;  %v1225_v42 = vor.u32 %v1224_v54, %v1221_v35 }
 0x109   : > { %3072 = vmatmul.mubr.msk.bf16.gmra.mrb[20].mxu0 %vm457_vm4, %v1877_v25  ;;  %v1212_v25 = vrot.slane %v1210_v26, 1 }
 0x10a   : > { %3075 = vmatprep.mubr.msk.bf16.mxu0 %vm3522_vm2, %v3521_v4  ;;  %v1208_v43 = vsel %vm1146_vm5, %v3745_v33, %v1207_v23  ;;  %v2076_v33 = vrot.slane %v3954_v15, 3  ;;  %v2078_v15 = vrot.slane %v3968_v24, 3 }
 0x10b   : > { %v1216_v28 = vor.u32 %v1215_v27, %v1212_v25 }
 0x10c   : > { %v2077_v36 = vsel %vm2064_vm9, %v2074_v59, %v2076_v33  ;;  %v2079_v13 = vsel %vm2064_vm9, %v2076_v33, %v2078_v15 }
 0x10d   : > { %v1217_v2 = vsel %vm1146_vm5, %v1207_v23, %v1216_v28 }
 0x10f   : > { %2908 = vmatmul.mubr.msk.bf16.gmra.mrb[8].mxu1 %vm457_vm4, %v974_v38  ;;  %v1231_v38 = vshll.u32 %v3862_v37, 16  ;;  %v2080_v37 = vrot.slane %v3981_v30, 3 }
 0x110   : > { %2911 = vmatprep.mubr.msk.bf16.mxu1 %vm3522_vm2, %v3521_v4 }
 0x111   : > { %3076 = vmatmul.mubr.msk.bf16.gmra.mrb[24].mxu0 %vm457_vm4, %v1886_v39  ;;  %v1226_v39 = vsel %vm1146_vm5, %v1216_v28, %v1225_v42  ;;  %v1233_v41 = vrot.slane %v1231_v38, 2  ;;  %v2081_v49 = vsel %vm2064_vm9, %v2078_v15, %v2080_v37 }
 0x112   : > { %3079 = vmatprep.mubr.msk.bf16.mxu0 %vm3522_vm2, %v3521_v4 }
 0x113   : > { %v1234_v48 = vor.u32 %v1233_v41, %v1230_v61 }
 0x115   : > { %v1235_v24 = vsel %vm1146_vm5, %v1225_v42, %v1234_v48 }
 0x117   : > { %2912 = vmatmul.mubr.msk.bf16.gmra.mrb[12].mxu1 %vm457_vm4, %v976_v0  ;;  %v2083_v0 = vsel %vm2064_vm9, %v2080_v37, %v2082_v51 }
 0x118   : > { %2915 = vmatprep.mubr.msk.bf16.mxu1 %vm3522_vm2, %v3521_v4 }
 0x119   : > { %3080 = vmatmul.mubr.msk.bf16.gmra.mrb[28].mxu0 %vm457_vm4, %v1895_v18 }
 0x11a   : > { %3083 = vmatprep.mubr.msk.bf16.mxu0 %vm3522_vm2, %v3521_v4 }
 0x11f   : > { %2916 = vmatmul.mubr.msk.bf16.gmra.mrb[16].mxu1 %vm457_vm4, %v978_v57 }
 0x120   : > { %2919 = vmatprep.mubr.msk.bf16.mxu1 %vm3522_vm2, %v3521_v4 }
 0x121   : > { %3084 = vmatmul.mubr.msk.bf16.gmra.mrb[32].mxu0 %vm457_vm4, %v1904_v60 }
 0x122   : > { %3089 = vmatprep.mubr.msk.bf16.mxu0 %vm3522_vm2, %v3521_v4 }
 0x127   : > { %2920 = vmatmul.mubr.msk.bf16.gmra.mrb[20].mxu1 %vm457_vm4, %v980_v3 }
 0x128   : > { %2923 = vmatprep.mubr.msk.bf16.mxu1 %vm3522_vm2, %v3521_v4 }
 0x129   : > { %3090 = vmatmul.mubr.msk.bf16.vlgmr.msra.gmra.mrb[0].mxu0 %vm457_vm4, %v2067_v40 }
 0x12a   : > { %3093 = vmatprep.mubr.msk.bf16.mxu0 %vm3522_vm2, %v3521_v4 }
 0x12f   : > { %2924 = vmatmul.mubr.msk.bf16.gmra.mrb[24].mxu1 %vm457_vm4, %v982_v17 }
 0x130   : > { %2927 = vmatprep.mubr.msk.bf16.mxu1 %vm3522_vm2, %v3521_v4 }
 0x131   : > { %3094 = vmatmul.mubr.msk.bf16.gmra.mrb[4].mxu0 %vm457_vm4, %v2069_v32 }
 0x132   : > { %3097 = vmatprep.mubr.msk.bf16.mxu0 %vm3522_vm2, %v3521_v4 }
 0x137   : > { %2928 = vmatmul.mubr.msk.bf16.gmra.mrb[28].mxu1 %vm457_vm4, %v984_v50 }
 0x138   : > { %2931 = vmatprep.mubr.msk.bf16.mxu1 %vm3522_vm2, %v3521_v4 }
 0x139   : > { %3098 = vmatmul.mubr.msk.bf16.gmra.mrb[8].mxu0 %vm457_vm4, %v2071_v11 }
 0x13a   : > { %3101 = vmatprep.mubr.msk.bf16.mxu0 %vm3522_vm2, %v3521_v4 }
 0x13f   : > { %2932 = vmatmul.mubr.msk.bf16.gmra.mrb[32].mxu1 %vm457_vm4, %v986_v21 }
 0x140   : > { %2957 = vmatprep.mubr.msk.bf16.mxu1 %vm3522_vm2, %v3521_v4 }
 0x141   : > { %3102 = vmatmul.mubr.msk.bf16.gmra.mrb[12].mxu0 %vm457_vm4, %v2073_v5 }
 0x142   : > { %3105 = vmatprep.mubr.msk.bf16.mxu0 %vm3522_vm2, %v3521_v4 }
 0x147   : > { %2958 = vmatmul.mubr.msk.bf16.vlgmr.msra.gmra.mrb[20].mxu1 %vm457_vm4, %v1208_v43 }
 0x148   : > { %2961 = vmatprep.mubr.msk.bf16.mxu1 %vm3522_vm2, %v3521_v4 }
 0x149   : > { %3106 = vmatmul.mubr.msk.bf16.gmra.mrb[16].mxu0 %vm457_vm4, %v2075_v10 }
 0x14a   : > { %3109 = vmatprep.mubr.msk.bf16.mxu0 %vm3522_vm2, %v3521_v4 }
 0x14f   : > { %2962 = vmatmul.mubr.msk.bf16.gmra.mrb[24].mxu1 %vm457_vm4, %v1217_v2 }
 0x150   : > { %2965 = vmatprep.mubr.msk.bf16.mxu1 %vm3522_vm2, %v3521_v4  ;;  %v2327_v11 = vpop.permute.xlu0 %2326 }
 0x151   : > { %3110 = vmatmul.mubr.msk.bf16.gmra.mrb[20].mxu0 %vm457_vm4, %v2077_v36 }
 0x152   : > { %3113 = vmatprep.mubr.msk.bf16.mxu0 %vm3522_vm2, %v3521_v4  ;;  %v2337_v33 = vpop.permute.xlu1 %2336 }
 0x154   : > { %v2332_v26 = vpop.permute.xlu0 %2331 }
 0x156   : > { %v2342_v48 = vpop.permute.xlu1 %2341 }
 0x157   : > { %2966 = vmatmul.mubr.msk.bf16.gmra.mrb[28].mxu1 %vm457_vm4, %v1226_v39 }
 0x158   : > { %2969 = vmatprep.mubr.msk.bf16.mxu1 %vm3522_vm2, %v3521_v4 }
 0x159   : > { %3114 = vmatmul.mubr.msk.bf16.gmra.mrb[24].mxu0 %vm457_vm4, %v2079_v13 }
 0x15a   : > { %3117 = vmatprep.mubr.msk.bf16.mxu0 %vm3522_vm2, %v3521_v4 }
 0x15f   : > { %2970 = vmatmul.mubr.msk.bf16.gmra.mrb[32].mxu1 %vm457_vm4, %v1235_v24 }
 0x161   : > { %3118 = vmatmul.mubr.msk.bf16.gmra.mrb[28].mxu0 %vm457_vm4, %v2081_v49 }
 0x162   : > { %3121 = vmatprep.mubr.msk.bf16.mxu0 %vm3522_vm2, %v3521_v4 }
 0x169   : > { %3122 = vmatmul.mubr.msk.bf16.gmra.mrb[32].mxu0 %vm457_vm4, %v2083_v0 }
 0x1d2   : > { %v1051_v18 = vpop.f32.mrb[0].mxu1 }
 0x1d3   : > { %v2901_v52 = vpop.f32.mrb[1].mxu1 }
 0x1d4   : > { %v1054_v30 = vpop.f32.mrb[2].mxu1 }
 0x1d5   : > { %v2902_v53 = vpop.f32.mrb[3].mxu1 }
 0x1da   : > { %v1059_v58 = vpop.f32.mrb[4].mxu1 }
 0x1db   : > { %v2905_v56 = vpop.f32.mrb[5].mxu1 }
 0x1dc   : > { %v1062_v57 = vpop.f32.mrb[6].mxu1 }
 0x1dd   : > { %v2906_v44 = vpop.f32.mrb[7].mxu1 }
 0x1e2   : > { %v1067_v60 = vpop.f32.mrb[8].mxu1 }
 0x1e3   : > { %v2909_v62 = vpop.f32.mrb[9].mxu1 }
 0x1e4   : > { %v1070_v12 = vpop.f32.mrb[10].mxu1 }
 0x1e5   : > { %v2910_v63 = vpop.f32.mrb[11].mxu1 }
 0x1ea   : > { %v4260_v1 = vpop.f32.mrb[12].mxu1 }
 0x1eb   : > { %v2913_v4 = vpop.f32.mrb[13].mxu1 }
 0x1ec   : > { %v4262_v46 = vpop.f32.mrb[14].mxu1 }
 0x1ed   : > { %v2914_v3 = vpop.f32.mrb[15].mxu1 }
 0x1f2   : > { %v4264_v40 = vpop.f32.mrb[16].mxu1 }
 0x1f3   : > { %v2917_v16 = vpop.f32.mrb[17].mxu1 }
 0x1f4   : > { %v4266_v45 = vpop.f32.mrb[18].mxu1 }
 0x1f5   : > { %v2918_v17 = vpop.f32.mrb[19].mxu1 }
 0x1fc   : > { %v2148_v32 = vpop.f32.mrb[0].mxu0 }
 0x1fd   : > { %v3127_v9 = vadd.f32 %v2148_v32, %v1051_v18  ;;  %v3091_v50 = vpop.f32.mrb[1].mxu0 }
 0x1fe   : > { %v2151_v7 = vpop.f32.mrb[2].mxu0 }
 0x1ff   : > { %v2244_v8 = vmul.f32 %v3127_v9, %v4271_v6  ;;  %v3128_v20 = vadd.f32 %v2151_v7, %v1054_v30  ;;  %v3092_v55 = vpop.f32.mrb[3].mxu0 }
 0x201   : > { %v2245_v21 = vmul.f32 %v3128_v20, %v4271_v6  ;;  %v2269_v22 = vadd.f32 %v4276_v14, %v2244_v8 }
 0x203   : > { %v2287_v29 = vmax.f32 %v2269_v22, 0.0  ;;  %v2270_v5 = vadd.f32 %v4276_v14, %v2245_v21 }
 0x204   : > { %v2156_v23 = vpop.f32.mrb[4].mxu0 }
 0x205   : > { %v2414_v19 = vmul.f32 %v2327_v11, %v2287_v29  ;;  %v3129_v59 = vadd.f32 %v2156_v23, %v1059_v58  ;;  %v3095_v43 = vpop.f32.mrb[5].mxu0  ;;  %v2288_v25 = vmax.f32 %v2270_v5, 0.0 }
 0x206   : > { %v2159_v27 = vpop.f32.mrb[6].mxu0 }
 0x207   : > { %v2246_v10 = vmul.f32 %v3129_v59, %v4271_v6  ;;  %v2415_v28 = vmul.f32 %v2332_v26, %v2288_v25  ;;  %v3130_v47 = vadd.f32 %v2159_v27, %v1062_v57  ;;  %v3096_v31 = vpop.f32.mrb[7].mxu0  ;;  %v2432_v2 = vsel %vm457_vm4, %v2414_v19, 0.0 }
 0x209   : > { %v2271_v35 = vadd.f32 %v4276_v14, %v2246_v10  ;;  %v2433_v54 = vsel %vm457_vm4, %v2415_v28, 0.0  ;;  %v2247_v36 = vmul.f32 %v3130_v47, %v4271_v6 }
 0x20a   : > { %v2434_v42 = vadd.f32 %v2433_v54, %v2432_v2 }
 0x20b   : > { %v2289_v34 = vmax.f32 %v2271_v35, 0.0  ;;  %v2272_v38 = vadd.f32 %v4276_v14, %v2247_v36 }
 0x20c   : > { %v2164_v15 = vpop.f32.mrb[8].mxu0 }
 0x20d   : > { %v2416_v39 = vmul.f32 %v2337_v33, %v2289_v34  ;;  %v2290_v61 = vmax.f32 %v2272_v38, 0.0  ;;  %v3131_v41 = vadd.f32 %v2164_v15, %v1067_v60  ;;  %v3099_v13 = vpop.f32.mrb[9].mxu0  ;;  %v2347_v60 = vpop.permute.xlu0 %2346 }
 0x20e   : > { %v2167_v37 = vpop.f32.mrb[10].mxu0 }
 0x20f   : > { %v2435_v24 = vsel %vm457_vm4, %v2416_v39, 0.0  ;;  %v2417_v49 = vmul.f32 %v2342_v48, %v2290_v61  ;;  %v2248_v51 = vmul.f32 %v3131_v41, %v4271_v6  ;;  %v3132_v0 = vadd.f32 %v2167_v37, %v1070_v12  ;;  %v3100_v18 = vpop.f32.mrb[11].mxu0  ;;  %v2352_v12 = vpop.permute.xlu1 %2351 }
 0x210   : > { %v2436_v52 = vadd.f32 %v2435_v24, %v2434_v42 }
 0x211   : > { %v2437_v30 = vsel %vm457_vm4, %v2417_v49, 0.0  ;;  %v2273_v53 = vadd.f32 %v4276_v14, %v2248_v51  ;;  %v2249_v58 = vmul.f32 %v3132_v0, %v4271_v6  ;;  %v2357_v5 = vpop.permute.xlu0 %2356 }
 0x212   : > { %v2438_v56 = vadd.f32 %v2437_v30, %v2436_v52 }
 0x213   : > { %v2291_v57 = vmax.f32 %v2273_v53, 0.0  ;;  %v2274_v44 = vadd.f32 %v4276_v14, %v2249_v58  ;;  %v2362_v28 = vpop.permute.xlu1 %2361 }
 0x214   : > { %v2172_v62 = vpop.f32.mrb[12].mxu0 }
 0x215   : > { %v2418_v63 = vmul.f32 %v2347_v60, %v2291_v57  ;;  %v2292_v4 = vmax.f32 %v2274_v44, 0.0  ;;  %v3133_v3 = vadd.f32 %v2172_v62, %v4260_v1  ;;  %v3103_v16 = vpop.f32.mrb[13].mxu0  ;;  %v2367_v61 = vpop.permute.xlu0 %2366 }
 0x216   : > { %v2175_v17 = vpop.f32.mrb[14].mxu0 }
 0x217   : > { %v2439_v32 = vsel %vm457_vm4, %v2418_v63, 0.0  ;;  %v2419_v9 = vmul.f32 %v2352_v12, %v2292_v4  ;;  %v2250_v50 = vmul.f32 %v3133_v3, %v4271_v6  ;;  %v3134_v7 = vadd.f32 %v2175_v17, %v4262_v46  ;;  %v3104_v11 = vpop.f32.mrb[15].mxu0  ;;  %v2372_v18 = vpop.permute.xlu1 %2371 }
 0x218   : > { %v2440_v8 = vadd.f32 %v2439_v32, %v2438_v56 }
 0x219   : > { %v2441_v20 = vsel %vm457_vm4, %v2419_v9, 0.0  ;;  %v2275_v55 = vadd.f32 %v4276_v14, %v2250_v50  ;;  %v2251_v21 = vmul.f32 %v3134_v7, %v4271_v6  ;;  %v2377_v12 = vpop.permute.xlu0 %2376 }
 0x21a   : > { %v1340_v22 = vpop.f32.mrb[20].mxu1  ;;  %v2442_v1 = vadd.f32 %v2441_v20, %v2440_v8 }
 0x21b   : > { %v2959_v29 = vpop.f32.mrb[21].mxu1  ;;  %v2293_v23 = vmax.f32 %v2275_v55, 0.0  ;;  %v2276_v26 = vadd.f32 %v4276_v14, %v2251_v21  ;;  %v2382_v21 = vpop.permute.xlu1 %2381 }
 0x21c   : > { %v1343_v19 = vpop.f32.mrb[22].mxu1  ;;  %v2180_v59 = vpop.f32.mrb[16].mxu0 }
 0x21d   : > { %v2960_v43 = vpop.f32.mrb[23].mxu1  ;;  %v2420_v25 = vmul.f32 %v2357_v5, %v2293_v23  ;;  %v2294_v46 = vmax.f32 %v2276_v26, 0.0  ;;  %v3135_v27 = vadd.f32 %v2180_v59, %v4264_v40  ;;  %v3107_v10 = vpop.f32.mrb[17].mxu0 }
 0x21e   : > { %v2183_v47 = vpop.f32.mrb[18].mxu0 }
 0x21f   : > { %v2443_v31 = vsel %vm457_vm4, %v2420_v25, 0.0  ;;  %v2421_v33 = vmul.f32 %v2362_v28, %v2294_v46  ;;  %v2252_v2 = vmul.f32 %v3135_v27, %v4271_v6  ;;  %v3136_v35 = vadd.f32 %v2183_v47, %v4266_v45  ;;  %v3108_v54 = vpop.f32.mrb[19].mxu0  ;;  %v2387_v28 = vpop.permute.xlu0 %2386 }
 0x220   : > { %v2444_v36 = vadd.f32 %v2443_v31, %v2442_v1 }
 0x221   : > { %v2445_v42 = vsel %vm457_vm4, %v2421_v33, 0.0  ;;  %v2277_v34 = vadd.f32 %v4276_v14, %v2252_v2  ;;  %v2253_v38 = vmul.f32 %v3136_v35, %v4271_v6 }
 0x222   : > { %v1348_v15 = vpop.f32.mrb[24].mxu1  ;;  %v2446_v40 = vadd.f32 %v2445_v42, %v2444_v36 }
 0x223   : > { %v2963_v39 = vpop.f32.mrb[25].mxu1  ;;  %v2295_v41 = vmax.f32 %v2277_v34, 0.0  ;;  %v2278_v13 = vadd.f32 %v4276_v14, %v2253_v38  ;;  %v2392_v38 = vpop.permute.xlu1 %2391 }
 0x224   : > { %v1351_v48 = vpop.f32.mrb[26].mxu1  ;;  %v2188_v37 = vpop.f32.mrb[20].mxu0 }
 0x225   : > { %v2964_v24 = vpop.f32.mrb[27].mxu1  ;;  %v2422_v49 = vmul.f32 %v2367_v61, %v2295_v41  ;;  %v2296_v45 = vmax.f32 %v2278_v13, 0.0  ;;  %v3137_v51 = vadd.f32 %v2188_v37, %v1340_v22  ;;  %v3111_v0 = vpop.f32.mrb[21].mxu0 }
 0x226   : > { %v2191_v52 = vpop.f32.mrb[22].mxu0 }
 0x227   : > { %v2447_v30 = vsel %vm457_vm4, %v2422_v49, 0.0  ;;  %v2423_v53 = vmul.f32 %v2372_v18, %v2296_v45  ;;  %v2254_v58 = vmul.f32 %v3137_v51, %v4271_v6  ;;  %v3138_v56 = vadd.f32 %v2191_v52, %v1343_v19  ;;  %v3112_v57 = vpop.f32.mrb[23].mxu0  ;;  %v2397_v18 = vpop.permute.xlu0 %2396 }
 0x228   : > { %v2448_v44 = vadd.f32 %v2447_v30, %v2446_v40  ;;  %v2402_v57 = vpop.permute.xlu1 %2401 }
 0x229   : > { %v2449_v60 = vsel %vm457_vm4, %v2423_v53, 0.0  ;;  %v2279_v62 = vadd.f32 %v4276_v14, %v2254_v58  ;;  %v2255_v63 = vmul.f32 %v3138_v56, %v4271_v6 }
 0x22a   : > { %v1356_v4 = vpop.f32.mrb[28].mxu1  ;;  %v2450_v3 = vadd.f32 %v2449_v60, %v2448_v44 }
 0x22b   : > { %v2967_v16 = vpop.f32.mrb[29].mxu1  ;;  %v2297_v17 = vmax.f32 %v2279_v62, 0.0  ;;  %v2280_v32 = vadd.f32 %v4276_v14, %v2255_v63 }
 0x22c   : > { %v1359_v9 = vpop.f32.mrb[30].mxu1  ;;  %v2196_v50 = vpop.f32.mrb[24].mxu0 }
 0x22d   : > { %v2968_v7 = vpop.f32.mrb[31].mxu1  ;;  %v2424_v11 = vmul.f32 %v2377_v12, %v2297_v17  ;;  %v2298_v8 = vmax.f32 %v2280_v32, 0.0  ;;  %v3139_v20 = vadd.f32 %v2196_v50, %v1348_v15  ;;  %v3115_v55 = vpop.f32.mrb[25].mxu0 }
 0x22e   : > { %v2199_v22 = vpop.f32.mrb[26].mxu0  ;;  %v2412_v55 = vpop.permute.xlu1 %2411 }
 0x22f   : > { %v2451_v1 = vsel %vm457_vm4, %v2424_v11, 0.0  ;;  %v2425_v29 = vmul.f32 %v2382_v21, %v2298_v8  ;;  %v2256_v5 = vmul.f32 %v3139_v20, %v4271_v6  ;;  %v3140_v23 = vadd.f32 %v2199_v22, %v1351_v48  ;;  %v3116_v26 = vpop.f32.mrb[27].mxu0  ;;  %v2407_v11 = vpop.permute.xlu0 %2406 }
 0x230   : > { %v2452_v19 = vadd.f32 %v2451_v1, %v2450_v3 }
 0x231   : > { %v2453_v59 = vsel %vm457_vm4, %v2425_v29, 0.0  ;;  %v2281_v43 = vadd.f32 %v4276_v14, %v2256_v5  ;;  %v2257_v25 = vmul.f32 %v3140_v23, %v4271_v6 }
 0x232   : > { %v1364_v46 = vpop.f32.mrb[32].mxu1  ;;  %v2454_v27 = vadd.f32 %v2453_v59, %v2452_v19 }
 0x233   : > { %v2971_v10 = vpop.f32.mrb[33].mxu1  ;;  %v2299_v47 = vmax.f32 %v2281_v43, 0.0  ;;  %v2282_v31 = vadd.f32 %v4276_v14, %v2257_v25  ;;  %v2305_v43 = vld [vmem:[#allocation2] sm:$0x1] }
 0x234   : > { %v1367_v33 = vpop.f32.mrb[34].mxu1  ;;  %v2204_v2 = vpop.f32.mrb[28].mxu0 }
 0x235   : > { %v2972_v35 = vpop.f32.mrb[35].mxu1  ;;  %v2426_v54 = vmul.f32 %v2387_v28, %v2299_v47  ;;  %v2300_v36 = vmax.f32 %v2282_v31, 0.0  ;;  %v3141_v42 = vadd.f32 %v2204_v2, %v1356_v4  ;;  %v3119_v34 = vpop.f32.mrb[29].mxu0  ;;  %v2486_v47 = vld [vmem:[#allocation3] sm:$0x1] (!%p2690_p8) }
 0x236   : > { %v2207_v15 = vpop.f32.mrb[30].mxu0 }
 0x237   : > { %v2455_v40 = vsel %vm457_vm4, %v2426_v54, 0.0  ;;  %v2427_v39 = vmul.f32 %v2392_v38, %v2300_v36  ;;  %v2258_v61 = vmul.f32 %v3141_v42, %v4271_v6  ;;  %v3142_v41 = vadd.f32 %v2207_v15, %v1359_v9  ;;  %v3120_v13 = vpop.f32.mrb[31].mxu0 }
 0x238   : > { %v2456_v48 = vadd.f32 %v2455_v40, %v2454_v27  ;;  %v2481_v27 = vld [vmem:[%s4365_s5] sm:$0x1] (!%p2690_p8) }
 0x239   : > { %v2457_v37 = vsel %vm457_vm4, %v2427_v39, 0.0  ;;  %v2283_v24 = vadd.f32 %v4276_v14, %v2258_v61  ;;  %v2259_v49 = vmul.f32 %v3142_v41, %v4271_v6 }
 0x23a   : > { %v2458_v45 = vadd.f32 %v2457_v37, %v2456_v48 }
 0x23b   : > { %v2301_v51 = vmax.f32 %v2283_v24, 0.0  ;;  %v2284_v0 = vadd.f32 %v4276_v14, %v2259_v49 }
 0x23c   : > { %v2212_v52 = vpop.f32.mrb[32].mxu0 }
 0x23d   : > { %v2428_v30 = vmul.f32 %v2397_v18, %v2301_v51  ;;  %v2302_v53 = vmax.f32 %v2284_v0, 0.0  ;;  %v3143_v58 = vadd.f32 %v2212_v52, %v1364_v46  ;;  %v3123_v56 = vpop.f32.mrb[33].mxu0 }
 0x23e   : > { %v2215_v44 = vpop.f32.mrb[34].mxu0 }
 0x23f   : > { %v2459_v60 = vsel %vm457_vm4, %v2428_v30, 0.0  ;;  %v2429_v62 = vmul.f32 %v2402_v57, %v2302_v53  ;;  %v2260_v63 = vmul.f32 %v3143_v58, %v4271_v6  ;;  %v3144_v4 = vadd.f32 %v2215_v44, %v1367_v33  ;;  %v3124_v3 = vpop.f32.mrb[35].mxu0 }
 0x240   : > { %v2460_v16 = vadd.f32 %v2459_v60, %v2458_v45 }
 0x241   : > { %v2461_v12 = vsel %vm457_vm4, %v2429_v62, 0.0  ;;  %v2285_v17 = vadd.f32 %v4276_v14, %v2260_v63  ;;  %v2261_v32 = vmul.f32 %v3144_v4, %v4271_v6 }
 0x242   : > { %v2462_v9 = vadd.f32 %v2461_v12, %v2460_v16 }
 0x243   : > { %v2303_v50 = vmax.f32 %v2285_v17, 0.0  ;;  %v2286_v7 = vadd.f32 %v4276_v14, %v2261_v32 }
 0x245   : > { %v2430_v8 = vmul.f32 %v2407_v11, %v2303_v50  ;;  %v2304_v20 = vmax.f32 %v2286_v7, 0.0 }
 0x247   : > { %v2463_v21 = vsel %vm457_vm4, %v2430_v8, 0.0  ;;  %v2431_v22 = vmul.f32 %v2412_v55, %v2304_v20 }
 0x248   : > { %v2464_v1 = vadd.f32 %v2463_v21, %v2462_v9 }
 0x249   : > { %v2465_v29 = vsel %vm457_vm4, %v2431_v22, 0.0 }
 0x24a   : > { %v2466_v5 = vadd.f32 %v2465_v29, %v2464_v1 }
 0x24c   : > { %v2467_v23 = vrot.slane %v2466_v5, 4 }
 0x24e   : > { %v2468_v26 = vadd.f32 %v2467_v23, %v2466_v5 }
 0x250   : > { %v2469_v19 = vrot.slane %v2468_v26, 2 }
 0x252   : > { %v2470_v59 = vadd.f32 %v2469_v19, %v2468_v26 }
 0x254   : > { %v2471_v6 = vrot.slane %v2470_v59, 1  ;;  %2479 = sbr.rel (%p2690_p8) target bundleno = 758 (0x2f6), region = 56 }
 0x256   : > { %v2472_v25 = vadd.f32 %v2471_v6, %v2470_v59 }
 0x258   : > { %v2473_v14 = vadd.f32 %v2472_v25, %v2305_v43 }
 0x25a   : > { %2475 = vst.msk [vmem:[#allocation2] sm:$0x1] %vm2474_vm10, %v2473_v14 }
 0x261   : > { %v2480_v46 = vld [vmem:[#allocation2] sm:$0x1] }
 0x262   : > { %v2482_v10 = vmul.f32 %v2481_v27, %v2480_v46 }
 0x264   : > { %v2483_v28 = vsel %vm2474_vm10, %v2482_v10, 0.0 }
 0x265   : > { %2484 = vadd.xlane.f32.xlu0 %v2483_v28 }
 0x2f2   : > { %v2485_v31 = vpop.xlane.xlu0 %2484 }
 0x2f3   : > { %v2487_v33 = vadd.f32 %v2486_v47, %v2485_v31 }
 0x2f5   : > { %2489 = vst.msk [vmem:[%s302_s13] sm:$0x1] %vm2488_vm11, %v2487_v33 }
 0x2f6 PF: > { %s19_s30 = sadd.s32 1, %s3518_s30   ;;  %s4368_s26 = smov %s3510_s28 }
 0x2f7   : > { %p16_p9 = scmp.ge.s32.totalorder %s19_s30, 6   ;;  %s4369_s27 = smov %s3514_s29 }
 0x2f8   : > { %s4370_s28 = smov %s4373_s6  ;;  %s4371_s29 = smov %s4377_s8 }
 0x2f9   :  { %18 = sbr.rel (!%p16_p9) target bundleno = 3 (0x3), region = 94 }

</bundles_post_ra>
